<compile_context>
chip_gen: v7x
topology: tpu7x:2x2x1
jax: 0.10.0
libtpu: 0.0.40
codegen_flags: <defaults>
</compile_context>

<pallas_src>
import functools

import jax
import jax.numpy as jnp
from jax.experimental import pallas as pl
from jax.experimental.pallas import tpu as pltpu


# ----------------------------- Pallas kernel -----------------------------

def _mlp_kernel(x_ref, w1_ref, b1_ref, w2_ref, b2_ref, o_ref):
    # In-kernel cast of the activation tile to the matmul dtype (bf16): x is
    # DMA'd once in its native dtype, no extra XLA cast pass over x in HBM.
    x = x_ref[...].astype(w1_ref.dtype)
    # fc1: (TILE_M, C_in) @ (C_in, H) on the MXU, f32 accumulation.
    h = jnp.dot(x, w1_ref[...], preferred_element_type=jnp.float32)
    h = h + b1_ref[...]                                   # bias in f32
    # Exact erf-based GELU (PyTorch nn.GELU default), f32 on VPU/EUP.
    h = 0.5 * h * (1.0 + jax.lax.erf(h * 0.7071067811865476))
    # fc2: cast hidden back to the matmul dtype for the MXU, f32 accumulation,
    # then store in the output dtype (caller's dtype, no extra writeback pass).
    h = h.astype(w2_ref.dtype)
    o_ref[...] = (jnp.dot(h, w2_ref[...], preferred_element_type=jnp.float32)
                  + b2_ref[...]).astype(o_ref.dtype)


# ------------------------------ wrapper ------------------------------

def mlp_forward(x, w1, b1, w2, b2, *, tile_m=None, use_bf16=True):
    """Fused Mlp forward.  x: (..., C_in); w1: (C_in, H); w2: (H, C_out)."""
    orig_lead = x.shape[:-1]
    c_in = x.shape[-1]
    hidden = w1.shape[1]
    c_out = w2.shape[1]

    x2 = x.reshape(-1, c_in)
    m = x2.shape[0]

    mm_dtype = jnp.bfloat16 if use_bf16 else x.dtype
    # In a real model these casts/reshapes are done once at parameter setup;
    # here they are tiny one-off ops on the weights only (never on x).
    w1k = w1 if w1.dtype == mm_dtype else w1.astype(mm_dtype)
    w2k = w2 if w2.dtype == mm_dtype else w2.astype(mm_dtype)
    b1k = b1.reshape(1, hidden).astype(jnp.float32)
    b2k = b2.reshape(1, c_out).astype(jnp.float32)

    # ---- row-tile selection (no explicit padding / output slicing) ----
    if tile_m is None:
        if m <= 1024:
            # Two balanced tiles -> one per TensorCore on v7x megacore; on the
            # single-TC v5e/v6e this is just 2 cheap (~0.35 us) grid steps.
            tile_m = max(8, pl.cdiv(pl.cdiv(m, 2), 8) * 8)
        else:
            tile_m = 512
    if tile_m >= m:
        tile_m = m                       # single full block: no (8,·) constraint
    else:
        tile_m = max(8, (tile_m // 8) * 8)
    grid_m = pl.cdiv(m, tile_m)          # ragged last tile handled by Pallas

    out = pl.pallas_call(
        _mlp_kernel,
        out_shape=jax.ShapeDtypeStruct((m, c_out), x.dtype),
        grid_spec=pltpu.PrefetchScalarGridSpec(
            num_scalar_prefetch=0,
            grid=(grid_m,),
            in_specs=[
                # activations: tiled over M, auto double-buffered
                pl.BlockSpec((tile_m, c_in), lambda i: (i, 0)),
                # weights/biases: constant index_map -> stay VMEM-resident
                # across all grid steps (only DMA'd once).
                # TODO(synk): for large C/H on v7x, single-buffer these
                # (pipeline_mode=pl.Buffered(1)) and tile the hidden dim with
                # a second ("arbitrary") grid axis + f32 VMEM accumulator.
                pl.BlockSpec((c_in, hidden), lambda i: (0, 0)),
                pl.BlockSpec((1, hidden), lambda i: (0, 0)),
                pl.BlockSpec((hidden, c_out), lambda i: (0, 0)),
                pl.BlockSpec((1, c_out), lambda i: (0, 0)),
            ],
            out_specs=pl.BlockSpec((tile_m, c_out), lambda i: (i, 0)),
        ),
        compiler_params=pltpu.CompilerParams(
            # independent row tiles -> shard across v7x's 2 TensorCores
            dimension_semantics=("parallel",),
            # 48 MiB: below v7x's 64 MiB physical VMEM, roomy on v5e/v6e.
            vmem_limit_bytes=48 * 1024 * 1024,
        ),
    )(x2, w1k, b1k, w2k, b2k)

    return out.reshape(*orig_lead, c_out)


# TODO(synk): nn.Dropout is identity for p=0.0 / eval mode, so it is omitted;
# a training-mode dropout would need pltpu.prng_seed + stateful_bernoulli.


# --------------------------- reference (pure JAX) ---------------------------

def mlp_reference(x, w1, b1, w2, b2):
    h = jnp.dot(x, w1) + b1
    h = 0.5 * h * (1.0 + jax.lax.erf(h * 0.7071067811865476))
    return jnp.dot(h, w2) + b2


# --------------------------------- main ---------------------------------

if __name__ == "__main__":
    # Mlp(in_features=128, hidden_features=512) on (B=2, N=192, C=128) tokens.
    # M = 384 rows -> 2 balanced grid steps of TILE_M=192 (one per v7x TC);
    # feature dims are lane-dense multiples of 128.
    B, N = 2, 192
    in_features = 128
    hidden_features = 512
    out_features = in_features

    key = jax.random.PRNGKey(0)
    kx, k1, k2, k3, k4 = jax.random.split(key, 5)
    std = 0.02
    x = jax.random.normal(kx, (B, N, in_features), jnp.float32)
    w1 = std * jax.random.normal(k1, (in_features, hidden_features), jnp.float32)
    b1 = std * jax.random.normal(k2, (hidden_features,), jnp.float32)
    w2 = std * jax.random.normal(k3, (hidden_features, out_features), jnp.float32)
    b2 = std * jax.random.normal(k4, (out_features,), jnp.float32)

    fwd = jax.jit(functools.partial(mlp_forward, use_bf16=True))
    out = jax.block_until_ready(fwd(x, w1, b1, w2, b2))

    assert out.shape == (B, N, out_features)
    assert out.dtype == x.dtype
    assert bool(jnp.all(jnp.isfinite(out)))

    # Loose tolerance: kernel uses bf16 matmul inputs with f32 accumulation.
    ref = mlp_reference(x, w1, b1, w2, b2)
    err = jnp.max(jnp.abs(out - ref)) / (jnp.max(jnp.abs(ref)) + 1e-6)
    assert bool(err < 5e-2), f"relative error too large: {err}"

    print("KERNEL_OK")
</pallas_src>

<mosaic_0001>
module attributes {stable_mosaic.version = 11 : i64} {
  func.func @_mlp_kernel(%arg0: i32, %arg1: memref<192x128xf32, #tpu.memory_space<vmem>>, %arg2: memref<128x512xbf16, #tpu.memory_space<vmem>>, %arg3: memref<1x512xf32, #tpu.memory_space<vmem>>, %arg4: memref<512x128xbf16, #tpu.memory_space<vmem>>, %arg5: memref<1x128xf32, #tpu.memory_space<vmem>>, %arg6: memref<192x128xf32, #tpu.memory_space<vmem>>) attributes {dimension_semantics = [#tpu.dimension_semantics<parallel>], iteration_bounds = array<i64: 2>, scalar_prefetch = 0 : i64, scratch_operands = 0 : i64, tpu.core_type = #tpu.core_type<tc>, window_params = [{transform_indices = @transform_0, window_bounds = array<i64: 192, 128>}, {pipeline_mode = #tpu.pipeline_mode<synchronous>, transform_indices = @transform_1, window_bounds = array<i64: 128, 512>}, {pipeline_mode = #tpu.pipeline_mode<synchronous>, transform_indices = @transform_2, window_bounds = array<i64: 1, 512>}, {pipeline_mode = #tpu.pipeline_mode<synchronous>, transform_indices = @transform_3, window_bounds = array<i64: 512, 128>}, {pipeline_mode = #tpu.pipeline_mode<synchronous>, transform_indices = @transform_4, window_bounds = array<i64: 1, 128>}, {transform_indices = @transform_5, window_bounds = array<i64: 192, 128>}]} {
    %c0 = arith.constant 0 : index
    %c0_0 = arith.constant 0 : index
    %0 = vector.load %arg1[%c0, %c0_0] : memref<192x128xf32, #tpu.memory_space<vmem>>, vector<192x128xf32>
    %1 = arith.truncf %0 : vector<192x128xf32> to vector<192x128xbf16>
    %c0_1 = arith.constant 0 : index
    %c0_2 = arith.constant 0 : index
    %2 = vector.load %arg2[%c0_1, %c0_2] : memref<128x512xbf16, #tpu.memory_space<vmem>>, vector<128x512xbf16>
    %cst = arith.constant dense<0.000000e+00> : vector<192x512xf32>
    %3 = tpu.matmul %1, %2, %cst {dimension_numbers = #tpu.dot_dimension_numbers<[1], [0], [0], [1], [0, 0, 1, 1], [], []>} : vector<192x128xbf16>, vector<128x512xbf16>, vector<192x512xf32> -> vector<192x512xf32>
    %c0_3 = arith.constant 0 : index
    %c0_4 = arith.constant 0 : index
    %4 = vector.load %arg3[%c0_3, %c0_4] : memref<1x512xf32, #tpu.memory_space<vmem>>, vector<1x512xf32>
    %5 = vector.broadcast %4 : vector<1x512xf32> to vector<192x512xf32>
    %6 = arith.addf %3, %5 : vector<192x512xf32>
    %cst_5 = arith.constant 5.000000e-01 : f32
    %7 = vector.broadcast %cst_5 : f32 to vector<192x512xf32>
    %8 = arith.mulf %7, %6 : vector<192x512xf32>
    %cst_6 = arith.constant 0.707106769 : f32
    %9 = vector.broadcast %cst_6 : f32 to vector<192x512xf32>
    %10 = arith.mulf %6, %9 : vector<192x512xf32>
    %11 = math.erf %10 : vector<192x512xf32>
    %cst_7 = arith.constant 1.000000e+00 : f32
    %12 = vector.broadcast %cst_7 : f32 to vector<192x512xf32>
    %13 = arith.addf %12, %11 : vector<192x512xf32>
    %14 = arith.mulf %8, %13 : vector<192x512xf32>
    %15 = arith.truncf %14 : vector<192x512xf32> to vector<192x512xbf16>
    %c0_8 = arith.constant 0 : index
    %c0_9 = arith.constant 0 : index
    %16 = vector.load %arg4[%c0_8, %c0_9] : memref<512x128xbf16, #tpu.memory_space<vmem>>, vector<512x128xbf16>
    %cst_10 = arith.constant dense<0.000000e+00> : vector<192x128xf32>
    %17 = tpu.matmul %15, %16, %cst_10 {dimension_numbers = #tpu.dot_dimension_numbers<[1], [0], [0], [1], [0, 0, 1, 1], [], []>} : vector<192x512xbf16>, vector<512x128xbf16>, vector<192x128xf32> -> vector<192x128xf32>
    %c0_11 = arith.constant 0 : index
    %c0_12 = arith.constant 0 : index
    %18 = vector.load %arg5[%c0_11, %c0_12] : memref<1x128xf32, #tpu.memory_space<vmem>>, vector<1x128xf32>
    %19 = vector.broadcast %18 : vector<1x128xf32> to vector<192x128xf32>
    %20 = arith.addf %17, %19 : vector<192x128xf32>
    %c0_13 = arith.constant 0 : index
    %c0_14 = arith.constant 0 : index
    %21 = vector.load %arg6[%c0_13, %c0_14] : memref<192x128xf32, #tpu.memory_space<vmem>>, vector<192x128xf32>
    tpu.vector_store %arg6[%c0_13, %c0_14], %20 {strides = array<i32>} : memref<192x128xf32, #tpu.memory_space<vmem>>, vector<192x128xf32>,
    return
  }
  func.func @transform_0(%arg0: i32) -> (i32, i32) {
    %c0_i32 = arith.constant 0 : i32
    %c0_i32_0 = arith.constant 0 : i32
    return %arg0, %c0_i32 : i32, i32
  }
  func.func @transform_1(%arg0: i32) -> (i32, i32) {
    %c0_i32 = arith.constant 0 : i32
    %c0_i32_0 = arith.constant 0 : i32
    %c0_i32_1 = arith.constant 0 : i32
    return %c0_i32, %c0_i32_0 : i32, i32
  }
  func.func @transform_2(%arg0: i32) -> (i32, i32) {
    %c0_i32 = arith.constant 0 : i32
    %c0_i32_0 = arith.constant 0 : i32
    %c0_i32_1 = arith.constant 0 : i32
    return %c0_i32, %c0_i32_0 : i32, i32
  }
  func.func @transform_3(%arg0: i32) -> (i32, i32) {
    %c0_i32 = arith.constant 0 : i32
    %c0_i32_0 = arith.constant 0 : i32
    %c0_i32_1 = arith.constant 0 : i32
    return %c0_i32, %c0_i32_0 : i32, i32
  }
  func.func @transform_4(%arg0: i32) -> (i32, i32) {
    %c0_i32 = arith.constant 0 : i32
    %c0_i32_0 = arith.constant 0 : i32
    %c0_i32_1 = arith.constant 0 : i32
    return %c0_i32, %c0_i32_0 : i32, i32
  }
  func.func @transform_5(%arg0: i32) -> (i32, i32) {
    %c0_i32 = arith.constant 0 : i32
    %c0_i32_0 = arith.constant 0 : i32
    return %arg0, %c0_i32 : i32, i32
  }
}

</mosaic_0001>

<bundles_post_ra>
// kernel: mlp_forward.1
= control target key start
LH: loop header
LB: loop body
LE: loop exit
PB: predicated region body
PF: predicated region fallthrough
CT: control target
= control target key end

     0   :  { %10 = vsyncpa [#allocation3], 0  ;;  %s3807_s0 = inlined_call_operand.vmem [shape: f32[384,128], index: 0, kind: input, shape index: {}]   ;;  %s3808_s1 = inlined_call_operand.vmem [shape: bf16[128,512], index: 1, kind: input, shape index: {}]   ;;  %s3809_s2 = inlined_call_operand.vmem [shape: f32[1,512], index: 2, kind: input, shape index: {}]   ;;  %s3810_s3 = inlined_call_operand.vmem [shape: bf16[512,128], index: 3, kind: input, shape index: {}]   ;;  %s3811_s4 = inlined_call_operand.vmem [shape: f32[1,128], index: 4, kind: input, shape index: {}]   ;;  %s3812_s5 = inlined_call_operand.hbm [shape: f32[384,128], index: 5, kind: output, shape index: {}]  }
   0x1   :  { %12 = vsyncpa [#allocation3 + $0x1], 0  ;;  %s2595_s18 = smov 0   ;;  %s2597_s19 = smov 0  }
   0x2   :  { %s2599_s20 = smov 0   ;;  %s2601_s21 = smov 0  }
   0x3 LB: > { %s2616_s22 = sadd.s32 4294967295, %s2559_s21   ;;  %s1932_s23 = sadd.s32 4294967294, %s2559_s21   ;;  %s2559_s21 = sphi %s2601_s21, %s3866_s21   ;;  %s2555_s20 = sphi %s2599_s20, %s3865_s20   ;;  %s2551_s19 = sphi %s2597_s19, %s3864_s19   ;;  %s2547_s18 = sphi %s2595_s18, %s3863_s18  }
   0x4   : > { %s2620_s24 = sadd.s32 1, %s2559_s21   ;;  %s135_s25 = sadd.s32 1, %s2555_s20 }
   0x5   : > { %s132_s26 = ssub.s32 %s2559_s21, %s2620_s24  ;;  %p145_p0 = scmp.ne.s32.totalorder %s2555_s20, %s2551_s19 }
   0x6   : > { %p133_p1 = scmp.eq.s32.totalorder %s132_s26, 0  ;;  %p146_p2 = scmp.eq.s32.totalorder %s2616_s22, 1 }
   0x7   : > { %p151_p3 = scmp.ne.s32.totalorder %s2551_s19, %s2547_s18  ;;  %p152_p4 = scmp.eq.s32.totalorder %s1932_s23, 1 }
   0x8   : > { %s2631_s27 = scalar_select %p133_p1, %s2555_s20, %s135_s25  }
   0x9   : > { %p2633_p5 = por %p146_p2, %p145_p0  ;;  %p2637_p6 = por %p152_p4, %p151_p3 }
   0xa   : > { %p1935_p7 = scmp.ge.s32.totalorder %s2559_s21, 1  ;;  %p191_p8 = scmp.lt.s32.totalorder %s2559_s21, 3 }
   0xc   : > { %p192_p9 = pnand %p1935_p7, %p191_p8 }
   0xe   : > { %195 = sbr.rel (%p192_p9) target bundleno = 671 (0x29f), region = 40 }
  0x15   : > { %v2225_v0 = vld [vmem:[%s3808_s1 + $0x4] ss:$16 sps:$4 sm:$0xff]   ;;  %v2227_v1 = vld [vmem:[%s3808_s1 + $0xc] ss:$16 sps:$4 sm:$0xff]   ;;  %v2561_v2 = vmov 0   ;;  %s219_s17 = smul.u32 24, %s2616_s22 }
  0x16   : > { %509 = vmatprep.mubr.bf16.mxu0 %v2561_v2  ;;  %662 = vmatprep.mubr.bf16.mxu1 %v2561_v2  ;;  %v2229_v3 = vld [vmem:[%s3808_s1] ss:$16 sps:$4 sm:$0xff]   ;;  %v2230_v4 = vld [vmem:[%s3808_s1 + $0x8] ss:$16 sps:$4 sm:$0xff]   ;;  %v2231_v5 = vld [vmem:[%s3808_s1 + $0x24] ss:$16 sps:$4 sm:$0xff]  }
  0x17   : > { %477 = vmatprep.subr.bf16.mxu0 %v2225_v0  ;;  %630 = vmatprep.subr.bf16.mxu1 %v2227_v1  ;;  %v2233_v6 = vld [vmem:[%s3808_s1 + $0x2c] ss:$16 sps:$4 sm:$0xff]   ;;  %v2235_v7 = vld [vmem:[%s3808_s1 + $0x20] ss:$16 sps:$4 sm:$0xff]   ;;  %v2236_v8 = vld [vmem:[%s3808_s1 + $0x28] ss:$16 sps:$4 sm:$0xff]  }
  0x18   : > { %478 = vmatpush1.bf16.msra.mxu0 %v2229_v3  ;;  %631 = vmatpush1.bf16.msra.mxu1 %v2230_v4  ;;  %v2237_v9 = vld [vmem:[%s3808_s1 + $0x44] ss:$16 sps:$4 sm:$0xff]   ;;  %v2239_v10 = vld [vmem:[%s3808_s1 + $0x4c] ss:$16 sps:$4 sm:$0xff]   ;;  %v2241_v11 = vld [vmem:[%s3808_s1 + $0x40] ss:$16 sps:$4 sm:$0xff]  }
  0x19   : > { %479 = vmatprep.subr.bf16.mxu0 %v2231_v5  ;;  %632 = vmatprep.subr.bf16.mxu1 %v2233_v6  ;;  %v2242_v12 = vld [vmem:[%s3808_s1 + $0x48] ss:$16 sps:$4 sm:$0xff]   ;;  %v2243_v13 = vld [vmem:[%s3808_s1 + $0x64] ss:$16 sps:$4 sm:$0xff]   ;;  %v2245_v14 = vld [vmem:[%s3808_s1 + $0x6c] ss:$16 sps:$4 sm:$0xff]  }
  0x1a   : > { %v2247_v15 = vld [vmem:[%s3808_s1 + $0x60] ss:$16 sps:$4 sm:$0xff]   ;;  %v2248_v16 = vld [vmem:[%s3808_s1 + $0x68] ss:$16 sps:$4 sm:$0xff]   ;;  %v2249_v17 = vld [vmem:[%s3808_s1 + $0x84] ss:$16 sps:$4 sm:$0xff]  }
  0x1b   : > { %v2251_v18 = vld [vmem:[%s3808_s1 + $0x8c] ss:$16 sps:$4 sm:$0xff]   ;;  %p220_p10 = scmp.lt.s32.totalorder %s219_s17, 47  ;;  %v2253_v19 = vld [vmem:[%s3808_s1 + $0x80] ss:$16 sps:$4 sm:$0xff]   ;;  %s216_s16 = sand.u32 1, %s2551_s19  }
  0x1c   : > { %480 = vmatpush1.bf16.msra.mxu0 %v2235_v7  ;;  %633 = vmatpush1.bf16.msra.mxu1 %v2236_v8  ;;  %v2254_v20 = vld [vmem:[%s3808_s1 + $0x88] ss:$16 sps:$4 sm:$0xff]   ;;  %v2255_v21 = vld [vmem:[%s3808_s1 + $0xa4] ss:$16 sps:$4 sm:$0xff]   ;;  %v2257_v22 = vld [vmem:[%s3808_s1 + $0xac] ss:$16 sps:$4 sm:$0xff]  }
  0x1d   : > { %481 = vmatprep.subr.bf16.mxu0 %v2237_v9  ;;  %634 = vmatprep.subr.bf16.mxu1 %v2239_v10  ;;  %s3868_s17 = smov (!%p220_p10, %s219_s17), 47  ;;  %v2259_v23 = vld [vmem:[%s3808_s1 + $0xa0] ss:$16 sps:$4 sm:$0xff]   ;;  %v2260_v24 = vld [vmem:[%s3808_s1 + $0xa8] ss:$16 sps:$4 sm:$0xff]   ;;  %s2182_s26 = smul.u32 192, %s216_s16 }
  0x1e   : > { %v2261_v25 = vld [vmem:[%s3808_s1 + $0xc4] ss:$16 sps:$4 sm:$0xff]   ;;  %v2263_v26 = vld [vmem:[%s3808_s1 + $0xcc] ss:$16 sps:$4 sm:$0xff]   ;;  %s1936_s11 = sshll.u32 %s3868_s17, 3  ;;  %s2005_s30 = smul.u32 3072, %s2616_s22 }
  0x1f   : > { %v2265_v27 = vld [vmem:[%s3808_s1 + $0xc0] ss:$16 sps:$4 sm:$0xff]   ;;  %v2266_v28 = vld [vmem:[%s3808_s1 + $0xc8] ss:$16 sps:$4 sm:$0xff]   ;;  %v2267_v29 = vld [vmem:[%s3808_s1 + $0xe4] ss:$16 sps:$4 sm:$0xff]   ;;  %s2739_s6 = scalar_lea.vmem %s3807_s0, %s1936_s11 }
  0x20   : > { %482 = vmatpush1.bf16.msra.mxu0 %v2241_v11  ;;  %635 = vmatpush1.bf16.msra.mxu1 %v2242_v12  ;;  %v2269_v30 = vld [vmem:[%s3808_s1 + $0xec] ss:$16 sps:$4 sm:$0xff]   ;;  %v2271_v31 = vld [vmem:[%s3808_s1 + $0xe0] ss:$16 sps:$4 sm:$0xff]   ;;  %v2272_v32 = vld [vmem:[%s3808_s1 + $0xe8] ss:$16 sps:$4 sm:$0xff]   ;;  %s3761_s9 = scalar_lea.hbm %s3812_s5, %s2005_s30 }
  0x21   : > { %483 = vmatprep.subr.bf16.mxu0 %v2243_v13  ;;  %636 = vmatprep.subr.bf16.mxu1 %v2245_v14  ;;  %v227_v33 = vld [vmem:[%s2739_s6] sm:$0xff]  ;;  %v228_v34 = vld [vmem:[%s2739_s6 + $0x8] sm:$0xff]  ;;  %v229_v40 = vld [vmem:[%s2739_s6 + $0x10] sm:$0xff]  ;;  %s3707_s17 = scalar_lea.vmem [#allocation2], %s2182_s26  ;;  %s3766_s22 = scalar_lea.sflag [#allocation3], %s216_s16 }
  0x22   : > { %v2273_v35 = vld [vmem:[%s3810_s3 + $0x40] sm:$0xff]   ;;  %v251_v36 = vpack.c.bf16 %v228_v34, %v227_v33  ;;  %v230_v41 = vld [vmem:[%s2739_s6 + $0x18] sm:$0xff]  ;;  %v2277_v42 = vld [vmem:[%s3810_s3 + $0x48] sm:$0xff]   ;;  %s2562_s11 = smov [#allocation2]  }
  0x23   : > { %v2274_v37 = vld [vmem:[%s3810_s3] sm:$0xff]   ;;  %v2278_v43 = vld [vmem:[%s3810_s3 + $0x8] sm:$0xff]   ;;  %v2281_v46 = vld [vmem:[%s3810_s3 + $0x50] sm:$0xff]   ;;  %v252_v47 = vpack.c.bf16 %v230_v41, %v229_v40  ;;  %s2501_s12 = sshll.u32 %s2562_s11, 4  ;;  %s2502_s12 = int_to_ptr.vmem [resolvable:$false] %s2501_s12 }
  0x24   : > { %484 = vmatpush1.bf16.msra.mxu0 %v2247_v15  ;;  %637 = vmatpush1.bf16.msra.mxu1 %v2248_v16  ;;  %v2275_v38 = vld [vmem:[%s3810_s3 + $0xc0] sm:$0xff]   ;;  %v2279_v44 = vld [vmem:[%s3810_s3 + $0xc8] sm:$0xff]   ;;  %v2282_v48 = vld [vmem:[%s3810_s3 + $0x10] sm:$0xff]   ;;  %s2503_s13 = scalar_lea.vmem %s2502_s12, 6144 }
  0x25   : > { %485 = vmatprep.subr.bf16.mxu0 %v2249_v17  ;;  %638 = vmatprep.subr.bf16.mxu1 %v2251_v18  ;;  %v2276_v39 = vld [vmem:[%s3810_s3 + $0x80] sm:$0xff]   ;;  %v2280_v45 = vld [vmem:[%s3810_s3 + $0x88] sm:$0xff]   ;;  %v2283_v49 = vld [vmem:[%s3810_s3 + $0xd0] sm:$0xff]  }
  0x26   : > { %v2284_v50 = vld [vmem:[%s3810_s3 + $0x90] sm:$0xff]   ;;  %v231_v51 = vld [vmem:[%s2739_s6 + $0x20] sm:$0xff]  ;;  %v232_v52 = vld [vmem:[%s2739_s6 + $0x28] sm:$0xff] }
  0x27   : > { %v2285_v53 = vld [vmem:[%s3810_s3 + $0x58] sm:$0xff]   ;;  %v2289_v57 = vld [vmem:[%s3810_s3 + $0x60] sm:$0xff]   ;;  %v253_v58 = vpack.c.bf16 %v232_v52, %v231_v51  ;;  %v233_v62 = vld [vmem:[%s2739_s6 + $0x30] sm:$0xff] }
  0x28   : > { %486 = vmatpush1.bf16.msra.mxu0 %v2253_v19  ;;  %639 = vmatpush1.bf16.msra.mxu1 %v2254_v20  ;;  %v2286_v54 = vld [vmem:[%s3810_s3 + $0x18] sm:$0xff]   ;;  %v2290_v59 = vld [vmem:[%s3810_s3 + $0x20] sm:$0xff]   ;;  %v2293_v63 = vld [vmem:[%s3810_s3 + $0x68] sm:$0xff]  }
  0x29   : > { %487 = vmatprep.subr.bf16.mxu0 %v2255_v21  ;;  %640 = vmatprep.subr.bf16.mxu1 %v2257_v22  ;;  %v2287_v55 = vld [vmem:[%s3810_s3 + $0xd8] sm:$0xff]   ;;  %v2291_v60 = vld [vmem:[%s3810_s3 + $0xe0] sm:$0xff]   ;;  %v2295_v1 = vld [vmem:[%s3810_s3 + $0xe8] sm:$0xff]  }
  0x2a   : > { %v2288_v56 = vld [vmem:[%s3810_s3 + $0x98] sm:$0xff]   ;;  %v2292_v61 = vld [vmem:[%s3810_s3 + $0xa0] sm:$0xff]   ;;  %v2294_v3 = vld [vmem:[%s3810_s3 + $0x28] sm:$0xff]  }
  0x2b   : > { %v234_v0 = vld [vmem:[%s2739_s6 + $0x38] sm:$0xff]  ;;  %v2296_v4 = vld [vmem:[%s3810_s3 + $0xa8] sm:$0xff]   ;;  %v235_v6 = vld [vmem:[%s2739_s6 + $0x40] sm:$0xff] }
  0x2c   : > { %488 = vmatpush1.bf16.msra.mxu0 %v2259_v23  ;;  %641 = vmatpush1.bf16.msra.mxu1 %v2260_v24  ;;  %v254_v5 = vpack.c.bf16 %v234_v0, %v233_v62  ;;  %v236_v7 = vld [vmem:[%s2739_s6 + $0x48] sm:$0xff]  ;;  %v237_v9 = vld [vmem:[%s2739_s6 + $0x50] sm:$0xff]  ;;  %v238_v10 = vld [vmem:[%s2739_s6 + $0x58] sm:$0xff] }
  0x2d   : > { %489 = vmatprep.subr.bf16.mxu0 %v2261_v25  ;;  %642 = vmatprep.subr.bf16.mxu1 %v2263_v26  ;;  %v255_v8 = vpack.c.bf16 %v236_v7, %v235_v6  ;;  %v256_v11 = vpack.c.bf16 %v238_v10, %v237_v9  ;;  %v239_v12 = vld [vmem:[%s2739_s6 + $0x60] sm:$0xff]  ;;  %v240_v13 = vld [vmem:[%s2739_s6 + $0x68] sm:$0xff]  ;;  %v241_v15 = vld [vmem:[%s2739_s6 + $0x70] sm:$0xff] }
  0x2e   : > { %v257_v14 = vpack.c.bf16 %v240_v13, %v239_v12  ;;  %v242_v16 = vld [vmem:[%s2739_s6 + $0x78] sm:$0xff]  ;;  %v243_v18 = vld [vmem:[%s2739_s6 + $0x80] sm:$0xff]  ;;  %v244_v19 = vld [vmem:[%s2739_s6 + $0x88] sm:$0xff] }
  0x2f   : > { %v258_v17 = vpack.c.bf16 %v242_v16, %v241_v15  ;;  %v259_v20 = vpack.c.bf16 %v244_v19, %v243_v18  ;;  %v245_v21 = vld [vmem:[%s2739_s6 + $0x90] sm:$0xff]  ;;  %v246_v22 = vld [vmem:[%s2739_s6 + $0x98] sm:$0xff]  ;;  %v247_v24 = vld [vmem:[%s2739_s6 + $0xa0] sm:$0xff] }
  0x30   : > { %490 = vmatpush1.bf16.msra.mxu0 %v2265_v27  ;;  %643 = vmatpush1.bf16.msra.mxu1 %v2266_v28  ;;  %v260_v23 = vpack.c.bf16 %v246_v22, %v245_v21  ;;  %v248_v25 = vld [vmem:[%s2739_s6 + $0xa8] sm:$0xff]  ;;  %v249_v27 = vld [vmem:[%s2739_s6 + $0xb0] sm:$0xff]  ;;  %v250_v28 = vld [vmem:[%s2739_s6 + $0xb8] sm:$0xff]  ;;  %s1870_s6 = sshll.u32 %s3707_s17, 4  ;;  %s3755_s6 = int_to_ptr.vmem [resolvable:$true] %s1870_s6 }
  0x31   : > { %491 = vmatprep.subr.bf16.mxu0 %v2267_v29  ;;  %644 = vmatprep.subr.bf16.mxu1 %v2269_v30  ;;  %v261_v26 = vpack.c.bf16 %v248_v25, %v247_v24  ;;  %v262_v29 = vpack.c.bf16 %v250_v28, %v249_v27  ;;  %v2297_v30 = vld [vmem:[%s3810_s3 + $0x70] sm:$0xff]   ;;  %v2301_v33 = vld [vmem:[%s3810_s3 + $0x78] sm:$0xff]   ;;  %v295_v41 = vld [vmem:[%s3809_s2] sm:$0xf]  ;;  %s2497_s10 = scalar_lea.vmem %s3755_s6, 3072  ;;  %p2504_p0 = scmp.lt.s32.totalorder %s3755_s6, %s2502_s12 }
  0x32   : > { %v2303_v34 = vld [vmem:[%s3810_s3 + $0xf8] sm:$0xff]   ;;  %p2498_p11 = scmp.ne.s32.totalorder %s3755_s6, %s2497_s10  ;;  %p2505_p1 = scmp.lt.s32.totalorder %s2503_s13, %s2497_s10 }
  0x34   : > { %492 = vmatpush1.bf16.msra.mxu0 %v2271_v31  ;;  %645 = vmatpush1.bf16.msra.mxu1 %v2272_v32  ;;  %v2298_v31 = vld [vmem:[%s3810_s3 + $0x30] sm:$0xff]   ;;  %p2499_p12 = pnand %p2498_p11, %p2633_p5  ;;  %p2506_p2 = por %p2505_p1, %p2504_p0 }
  0x35   : > { %2006 = vmatprep.subr.bf16.mxu0 %v2273_v35  ;;  %2094 = vmatprep.subr.bf16.mxu1 %v2275_v38  ;;  %v2299_v32 = vld [vmem:[%s3810_s3 + $0xf0] sm:$0xff]   ;;  %v2302_v35 = vld [vmem:[%s3810_s3 + $0x38] sm:$0xff]  }
  0x36   : > { %p2500_p13 = pneg %p2499_p12 }
  0x37   : > { %510 = vmatmul.mubr.bf16.vlgmr.msra.gmra.mrb[0].mxu0 %v251_v36  ;;  %663 = vmatmul.mubr.bf16.vlgmr.msra.gmra.mrb[0].mxu1 %v251_v36  ;;  %v2304_v36 = vld [vmem:[%s3810_s3 + $0xb8] sm:$0xff]  }
  0x38   : > { %519 = vmatprep.mubr.bf16.mxu0 %v2561_v2  ;;  %672 = vmatprep.mubr.bf16.mxu1 %v2561_v2  ;;  %p2507_p3 = pnand %p2506_p2, %p2500_p13 }
  0x39   : > { %2007 = vmatpush3.bf16.msra.mxu0 %v2274_v37  ;;  %2095 = vmatpush3.bf16.msra.mxu1 %v2276_v39  ;;  %v297_v37 = vlaneseq }
  0x3a   : > { %2008 = vmatprep.subr.bf16.mxu0 %v2277_v42  ;;  %2096 = vmatprep.subr.bf16.mxu1 %v2279_v44 }
  0x3b   : > { %v298_v38 = vshrl.u32 %v297_v37, 7 }
  0x3d   : > { %2009 = vmatpush3.bf16.msra.mxu0 %v2278_v43  ;;  %2097 = vmatpush3.bf16.msra.mxu1 %v2280_v45  ;;  %v299_v39 = vsub.s32 0, %v298_v38  ;;  %v307_v40 = vsub.s32 2, %v298_v38  ;;  %v303_v42 = vsub.s32 1, %v298_v38  ;;  %v311_v43 = vsub.s32 3, %v298_v38 }
  0x3e   : > { %2010 = vmatprep.subr.bf16.mxu0 %v2281_v46  ;;  %2098 = vmatprep.subr.bf16.mxu1 %v2283_v49 }
  0x3f   : > { %520 = vmatmul.mubr.bf16.gmra.mrb[4].mxu0 %v252_v47  ;;  %673 = vmatmul.mubr.bf16.gmra.mrb[4].mxu1 %v252_v47  ;;  %v2892_v44 = vrot.slane %v295_v41, %v299_v39  ;;  %v2894_v45 = vrot.slane %v295_v41, %v307_v40  ;;  %v2896_v46 = vrot.slane %v295_v41, %v303_v42 }
  0x40   : > { %529 = vmatprep.mubr.bf16.mxu0 %v2561_v2  ;;  %682 = vmatprep.mubr.bf16.mxu1 %v2561_v2  ;;  %v2898_v47 = vrot.slane %v295_v41, %v311_v43 }
  0x41   : > { %2011 = vmatpush3.bf16.msra.mxu0 %v2282_v48  ;;  %2099 = vmatpush3.bf16.msra.mxu1 %v2284_v50 }
  0x42   : > { %2012 = vmatprep.subr.bf16.mxu0 %v2285_v53  ;;  %2100 = vmatprep.subr.bf16.mxu1 %v2287_v55 }
  0x45   : > { %2013 = vmatpush3.bf16.msra.mxu0 %v2286_v54  ;;  %2101 = vmatpush3.bf16.msra.mxu1 %v2288_v56 }
  0x46   : > { %2014 = vmatprep.subr.bf16.mxu0 %v2289_v57  ;;  %2102 = vmatprep.subr.bf16.mxu1 %v2291_v60 }
  0x47   : > { %530 = vmatmul.mubr.bf16.gmra.mrb[8].mxu0 %v253_v58  ;;  %683 = vmatmul.mubr.bf16.gmra.mrb[8].mxu1 %v253_v58 }
  0x48   : > { %539 = vmatprep.mubr.bf16.mxu0 %v2561_v2  ;;  %692 = vmatprep.mubr.bf16.mxu1 %v2561_v2 }
  0x49   : > { %2015 = vmatpush3.bf16.msra.mxu0 %v2290_v59  ;;  %2103 = vmatpush3.bf16.msra.mxu1 %v2292_v61 }
  0x4a   : > { %2016 = vmatprep.subr.bf16.mxu0 %v2293_v63  ;;  %2104 = vmatprep.subr.bf16.mxu1 %v2295_v1 }
  0x4d   : > { %2017 = vmatpush3.bf16.msra.mxu0 %v2294_v3  ;;  %2105 = vmatpush3.bf16.msra.mxu1 %v2296_v4 }
  0x4e   : > { %2018 = vmatprep.subr.bf16.mxu0 %v2297_v30  ;;  %2106 = vmatprep.subr.bf16.mxu1 %v2299_v32 }
  0x4f   : > { %540 = vmatmul.mubr.bf16.gmra.mrb[12].mxu0 %v254_v5  ;;  %693 = vmatmul.mubr.bf16.gmra.mrb[12].mxu1 %v254_v5 }
  0x50   : > { %549 = vmatprep.mubr.bf16.mxu0 %v2561_v2  ;;  %702 = vmatprep.mubr.bf16.mxu1 %v2561_v2 }
  0x51   : > { %2019 = vmatpush3.bf16.msra.mxu0 %v2298_v31 }
  0x52   : > { %2020 = vmatprep.subr.bf16.mxu0 %v2301_v33 }
  0x55   : > { %2021 = vmatpush3.bf16.msra.mxu0 %v2302_v35 }
  0x57   : > { %550 = vmatmul.mubr.bf16.gmra.mrb[16].mxu0 %v255_v8  ;;  %703 = vmatmul.mubr.bf16.gmra.mrb[16].mxu1 %v255_v8 }
  0x58   : > { %559 = vmatprep.mubr.bf16.mxu0 %v2561_v2  ;;  %712 = vmatprep.mubr.bf16.mxu1 %v2561_v2 }
  0x5f   : > { %560 = vmatmul.mubr.bf16.gmra.mrb[20].mxu0 %v256_v11  ;;  %713 = vmatmul.mubr.bf16.gmra.mrb[20].mxu1 %v256_v11 }
  0x60   : > { %569 = vmatprep.mubr.bf16.mxu0 %v2561_v2  ;;  %722 = vmatprep.mubr.bf16.mxu1 %v2561_v2 }
  0x67   : > { %570 = vmatmul.mubr.bf16.gmra.mrb[24].mxu0 %v257_v14  ;;  %723 = vmatmul.mubr.bf16.gmra.mrb[24].mxu1 %v257_v14 }
  0x68   : > { %579 = vmatprep.mubr.bf16.mxu0 %v2561_v2  ;;  %732 = vmatprep.mubr.bf16.mxu1 %v2561_v2 }
  0x6f   : > { %580 = vmatmul.mubr.bf16.gmra.mrb[28].mxu0 %v258_v17  ;;  %733 = vmatmul.mubr.bf16.gmra.mrb[28].mxu1 %v258_v17 }
  0x70   : > { %589 = vmatprep.mubr.bf16.mxu0 %v2561_v2  ;;  %742 = vmatprep.mubr.bf16.mxu1 %v2561_v2 }
  0x77   : > { %590 = vmatmul.mubr.bf16.gmra.mrb[32].mxu0 %v259_v20  ;;  %743 = vmatmul.mubr.bf16.gmra.mrb[32].mxu1 %v259_v20 }
  0x78   : > { %599 = vmatprep.mubr.bf16.mxu0 %v2561_v2  ;;  %752 = vmatprep.mubr.bf16.mxu1 %v2561_v2 }
  0x7f   : > { %600 = vmatmul.mubr.bf16.gmra.mrb[36].mxu0 %v260_v23  ;;  %753 = vmatmul.mubr.bf16.gmra.mrb[36].mxu1 %v260_v23 }
  0x80   : > { %609 = vmatprep.mubr.bf16.mxu0 %v2561_v2  ;;  %762 = vmatprep.mubr.bf16.mxu1 %v2561_v2 }
  0x87   : > { %610 = vmatmul.mubr.bf16.gmra.mrb[40].mxu0 %v261_v26  ;;  %763 = vmatmul.mubr.bf16.gmra.mrb[40].mxu1 %v261_v26 }
  0x88   : > { %619 = vmatprep.mubr.bf16.mxu0 %v2561_v2  ;;  %772 = vmatprep.mubr.bf16.mxu1 %v2561_v2  ;;  %v2300_v2 = vld [vmem:[%s3810_s3 + $0xb0] sm:$0xff]  }
  0x89   : > { %2107 = vmatpush3.bf16.msra.mxu1 %v2300_v2 }
  0x8a   : > { %2108 = vmatprep.subr.bf16.mxu1 %v2303_v34 }
  0x8d   : > { %2109 = vmatpush3.bf16.msra.mxu1 %v2304_v36 }
  0x8f   : > { %620 = vmatmul.mubr.bf16.gmra.mrb[44].mxu0 %v262_v29  ;;  %773 = vmatmul.mubr.bf16.gmra.mrb[44].mxu1 %v262_v29 }
 0x10a   : > { %v511_v48 = vpop.f32.mrb[0].mxu0  ;;  %v664_v49 = vpop.f32.mrb[0].mxu1 }
 0x10b   : > { %v512_v50 = vadd.f32 %v511_v48, %v2892_v44  ;;  %v665_v51 = vadd.f32 %v664_v49, %v2894_v45  ;;  %v513_v52 = vpop.f32.mrb[1].mxu0  ;;  %v666_v53 = vpop.f32.mrb[1].mxu1 }
 0x10c   : > { %v514_v54 = vadd.f32 %v513_v52, %v2896_v46  ;;  %v667_v55 = vadd.f32 %v666_v53, %v2898_v47  ;;  %v515_v56 = vpop.f32.mrb[2].mxu0  ;;  %v668_v57 = vpop.f32.mrb[2].mxu1 }
 0x10d   : > { %v879_v58 = vmul.f32 0.70710677, %v512_v50  ;;  %v881_v59 = vmul.f32 0.70710677, %v665_v51  ;;  %v516_v62 = vadd.f32 %v515_v56, %v2892_v44  ;;  %v669_v63 = vadd.f32 %v668_v57, %v2894_v45  ;;  %v517_v0 = vpop.f32.mrb[3].mxu0  ;;  %v670_v1 = vpop.f32.mrb[3].mxu1 }
 0x10e   : > { %v880_v60 = vmul.f32 0.70710677, %v514_v54  ;;  %v882_v61 = vmul.f32 0.70710677, %v667_v55  ;;  %v518_v3 = vadd.f32 %v517_v0, %v2896_v46  ;;  %v671_v4 = vadd.f32 %v670_v1, %v2898_v47 }
 0x10f   : > { %2305 = verf.f32 %v879_v58  ;;  %v883_v5 = vmul.f32 0.70710677, %v516_v62  ;;  %v885_v6 = vmul.f32 0.70710677, %v669_v63  ;;  %v783_v23 = vmul.f32 0.5, %v512_v50 }
 0x110   : > { %2307 = verf.f32 %v881_v59  ;;  %v884_v7 = vmul.f32 0.70710677, %v518_v3  ;;  %v886_v9 = vmul.f32 0.70710677, %v671_v4  ;;  %v785_v30 = vmul.f32 0.5, %v665_v51 }
 0x111   : > { %2309 = verf.f32 %v880_v60  ;;  %v784_v31 = vmul.f32 0.5, %v514_v54  ;;  %v2915_v32 = vmul.f32 0.5, %v667_v55  ;;  %v787_v2 = vmul.f32 0.5, %v516_v62 }
 0x112   : > { %2311 = verf.f32 %v882_v61  ;;  %v521_v8 = vpop.f32.mrb[4].mxu0  ;;  %v674_v11 = vpop.f32.mrb[4].mxu1  ;;  %v789_v35 = vmul.f32 0.5, %v669_v63  ;;  %v2917_v40 = vmul.f32 0.5, %v518_v3  ;;  %v2919_v41 = vmul.f32 0.5, %v671_v4 }
 0x113   : > { %2313 = verf.f32 %v883_v5  ;;  %v522_v10 = vadd.f32 %v521_v8, %v2892_v44  ;;  %v523_v12 = vpop.f32.mrb[5].mxu0  ;;  %v675_v13 = vadd.f32 %v674_v11, %v2894_v45  ;;  %v676_v15 = vpop.f32.mrb[5].mxu1 }
 0x114   : > { %2315 = verf.f32 %v885_v6  ;;  %v524_v14 = vadd.f32 %v523_v12, %v2896_v46  ;;  %v525_v16 = vpop.f32.mrb[6].mxu0  ;;  %v677_v18 = vadd.f32 %v676_v15, %v2898_v47  ;;  %v678_v19 = vpop.f32.mrb[6].mxu1 }
 0x115   : > { %2317 = verf.f32 %v884_v7  ;;  %v887_v17 = vmul.f32 0.70710677, %v522_v10  ;;  %v527_v20 = vpop.f32.mrb[7].mxu0  ;;  %v889_v21 = vmul.f32 0.70710677, %v675_v13  ;;  %v680_v22 = vpop.f32.mrb[7].mxu1  ;;  %v526_v26 = vadd.f32 %v525_v16, %v2892_v44 }
 0x116   : > { %2319 = verf.f32 %v886_v9  ;;  %v888_v24 = vmul.f32 0.70710677, %v524_v14  ;;  %v890_v25 = vmul.f32 0.70710677, %v677_v18  ;;  %v679_v27 = vadd.f32 %v678_v19, %v2894_v45 }
 0x117   : > { %2321 = verf.f32 %v887_v17  ;;  %v528_v28 = vadd.f32 %v527_v20, %v2896_v46  ;;  %v891_v36 = vmul.f32 0.70710677, %v526_v26  ;;  %v681_v43 = vadd.f32 %v680_v22, %v2898_v47 }
 0x118   : > { %2323 = verf.f32 %v889_v21  ;;  %v893_v42 = vmul.f32 0.70710677, %v679_v27  ;;  %v2922_v51 = vmul.f32 0.5, %v522_v10  ;;  %v2924_v56 = vmul.f32 0.5, %v675_v13 }
 0x119   : > { %v2306_v29 = vpop.eup %2305  ;;  %2325 = verf.f32 %v888_v24  ;;  %v892_v52 = vmul.f32 0.70710677, %v528_v28  ;;  %v2926_v57 = vmul.f32 0.5, %v524_v14  ;;  %v2928_v58 = vmul.f32 0.5, %v677_v18 }
 0x11a   : > { %v2308_v33 = vpop.eup %2307  ;;  %v1071_v34 = vadd.f32 1.0, %v2306_v29  ;;  %v531_v37 = vpop.f32.mrb[8].mxu0  ;;  %2327 = verf.f32 %v890_v25  ;;  %v2934_v1 = vmul.f32 0.5, %v526_v26  ;;  %v894_v6 = vmul.f32 0.70710677, %v681_v43 }
 0x11b   : > { %v684_v38 = vpop.f32.mrb[8].mxu1  ;;  %v2310_v39 = vpop.eup %2309  ;;  %v1073_v50 = vadd.f32 1.0, %v2308_v33  ;;  %2329 = verf.f32 %v891_v36  ;;  %v532_v7 = vadd.f32 %v531_v37, %v2892_v44  ;;  %v2949_v19 = vmul.f32 0.5, %v679_v27 }
 0x11c   : > { %v533_v48 = vpop.f32.mrb[9].mxu0  ;;  %v2312_v49 = vpop.eup %2311  ;;  %v2932_v62 = vmul.f32 %v1071_v34, %v783_v23  ;;  %v1072_v63 = vadd.f32 1.0, %v2310_v39  ;;  %2331 = verf.f32 %v893_v42  ;;  %v685_v11 = vadd.f32 %v684_v38, %v2894_v45 }
 0x11d   : > { %v686_v53 = vpop.f32.mrb[9].mxu1  ;;  %v535_v54 = vpop.f32.mrb[10].mxu0  ;;  %v2939_v9 = vmul.f32 %v1073_v50, %v785_v30  ;;  %2333 = verf.f32 %v892_v52  ;;  %v1074_v13 = vadd.f32 1.0, %v2312_v49  ;;  %v895_v15 = vmul.f32 0.70710677, %v532_v7 }
 0x11e   : > { %v2314_v55 = vpop.eup %2313  ;;  %v688_v59 = vpop.f32.mrb[10].mxu1  ;;  %v534_v16 = vadd.f32 %v533_v48, %v2896_v46  ;;  %v2951_v20 = vmul.f32 0.5, %v528_v28  ;;  %v2953_v21 = vmul.f32 0.5, %v681_v43  ;;  %v2957_v24 = vmul.f32 %v1072_v63, %v784_v31 }
 0x11f   : > { %v2930_v60 = vpop.f32.mrb[11].mxu0  ;;  %v2316_v61 = vpop.eup %2315  ;;  %v1075_v0 = vadd.f32 1.0, %v2314_v55  ;;  %2335 = verf.f32 %v894_v6  ;;  %v897_v33 = vmul.f32 0.70710677, %v685_v11  ;;  %v2970_v31 = vmul.f32 %v1074_v13, %v2915_v32 }
 0x120   : > { %v2936_v3 = vpop.f32.mrb[11].mxu1  ;;  %v2318_v4 = vpop.eup %2317  ;;  %v1077_v5 = vadd.f32 1.0, %v2316_v61  ;;  %2337 = verf.f32 %v895_v15  ;;  %v896_v37 = vmul.f32 0.70710677, %v534_v16  ;;  %v687_v38 = vadd.f32 %v686_v53, %v2898_v47 }
 0x121   : > { %v2320_v8 = vpop.eup %2319  ;;  %v2941_v10 = vmul.f32 %v1075_v0, %v787_v2  ;;  %v1076_v26 = vadd.f32 1.0, %v2318_v4  ;;  %v2977_v48 = vmul.f32 0.5, %v532_v7  ;;  %2339 = verf.f32 %v897_v33 }
 0x122   : > { %v2322_v12 = vpop.eup %2321  ;;  %v2944_v14 = vmul.f32 %v1077_v5, %v789_v35  ;;  %v541_v22 = vpop.f32.mrb[12].mxu0  ;;  %v1078_v2 = vadd.f32 1.0, %v2320_v8  ;;  %v536_v49 = vadd.f32 %v535_v54, %v2892_v44  ;;  %v689_v50 = vadd.f32 %v688_v59, %v2894_v45 }
 0x123   : > { %v2324_v17 = vpop.eup %2323  ;;  %v1263_v18 = vpack.c.bf16 %v2941_v10, %v2932_v62  ;;  %v2955_v23 = vpop.f32.mrb[12].mxu1  ;;  %v1079_v28 = vadd.f32 1.0, %v2322_v12  ;;  %v1172_v32 = vmul.f32 %v1076_v26, %v2917_v40  ;;  %v2982_v61 = vmul.f32 0.5, %v685_v11 }
 0x124   : > { %v1265_v25 = vpack.c.bf16 %v2944_v14, %v2939_v9  ;;  %v2961_v29 = vpop.f32.mrb[13].mxu0  ;;  %v2963_v30 = vpop.f32.mrb[13].mxu1  ;;  %v1081_v36 = vadd.f32 1.0, %v2324_v17  ;;  %2341 = verf.f32 %v896_v37  ;;  %v1174_v53 = vmul.f32 %v1078_v2, %v2919_v41 }
 0x125   : > { %v2326_v27 = vpop.eup %2325  ;;  %v2965_v34 = vpop.f32.mrb[14].mxu0  ;;  %v2986_v63 = vmul.f32 %v1079_v28, %v2922_v51  ;;  %v898_v0 = vmul.f32 0.70710677, %v687_v38  ;;  %v899_v4 = vmul.f32 0.70710677, %v536_v49  ;;  %v2991_v59 = vmul.f32 0.5, %v534_v16 }
 0x126   : > { %v2967_v35 = vpop.f32.mrb[14].mxu1  ;;  %v2973_v39 = vpop.f32.mrb[15].mxu0  ;;  %v1080_v55 = vadd.f32 1.0, %v2326_v27  ;;  %v2989_v6 = vmul.f32 %v1081_v36, %v2924_v56  ;;  %v901_v7 = vmul.f32 0.70710677, %v689_v50  ;;  %v538_v11 = vadd.f32 %v2930_v60, %v2896_v46 }
 0x127   : > { %v2975_v42 = vpop.f32.mrb[15].mxu1  ;;  %v2328_v43 = vpop.eup %2327  ;;  %2343 = verf.f32 %v898_v0  ;;  %v691_v41 = vadd.f32 %v2936_v3, %v2898_v47  ;;  %v3004_v13 = vmul.f32 0.5, %v687_v38  ;;  %v542_v15 = vadd.f32 %v541_v22, %v2892_v44 }
 0x128   : > { %v2330_v52 = vpop.eup %2329  ;;  %v1082_v54 = vadd.f32 1.0, %v2328_v43  ;;  %v3002_v56 = vmul.f32 %v1080_v55, %v2926_v57  ;;  %2345 = verf.f32 %v899_v4  ;;  %v3011_v26 = vmul.f32 0.5, %v536_v49 }
 0x129   : > { %v2332_v5 = vpop.eup %2331  ;;  %v1083_v8 = vadd.f32 1.0, %v2330_v52  ;;  %2347 = verf.f32 %v901_v7  ;;  %v900_v3 = vmul.f32 0.70710677, %v538_v11  ;;  %v902_v36 = vmul.f32 0.70710677, %v691_v41 }
 0x12a   : > { %v2334_v40 = vpop.eup %2333  ;;  %v2997_v51 = vpop.f32.mrb[16].mxu0  ;;  %v1085_v60 = vadd.f32 1.0, %v2332_v5  ;;  %v3018_v28 = vmul.f32 %v1082_v54, %v2928_v58  ;;  %v903_v22 = vmul.f32 0.70710677, %v542_v15  ;;  %v695_v49 = vadd.f32 %v2955_v23, %v2894_v45 }
 0x12b   : > { %v2999_v12 = vpop.f32.mrb[16].mxu1  ;;  %v3007_v16 = vpop.f32.mrb[17].mxu0  ;;  %v1084_v33 = vadd.f32 1.0, %v2334_v40  ;;  %v3023_v43 = vmul.f32 %v1083_v8, %v2934_v1  ;;  %2349 = verf.f32 %v900_v3  ;;  %v544_v52 = vadd.f32 %v2961_v29, %v2896_v46 }
 0x12c   : > { %v3009_v17 = vpop.f32.mrb[17].mxu1  ;;  %v3013_v27 = vpop.f32.mrb[18].mxu0  ;;  %2351 = verf.f32 %v902_v36  ;;  %v697_v58 = vadd.f32 %v2963_v30, %v2898_v47  ;;  %v1264_v0 = vpack.c.bf16 %v1172_v32, %v2957_v24  ;;  %v1266_v4 = vpack.c.bf16 %v1174_v53, %v2970_v31 }
 0x12d   : > { %v3015_v2 = vpop.f32.mrb[18].mxu1  ;;  %v2336_v57 = vpop.eup %2335  ;;  %v3036_v1 = vmul.f32 %v1085_v60, %v2949_v19  ;;  %v3038_v7 = vmul.f32 0.5, %v689_v50  ;;  %v905_v23 = vmul.f32 0.70710677, %v695_v49  ;;  %v3041_v29 = vmul.f32 %v1084_v33, %v2951_v20 }
 0x12e   : > { %v3020_v37 = vpop.f32.mrb[19].mxu0  ;;  %v2338_v38 = vpop.eup %2337  ;;  %v1086_v54 = vadd.f32 1.0, %v2336_v57  ;;  %2353 = verf.f32 %v903_v22  ;;  %v904_v3 = vmul.f32 0.70710677, %v544_v52  ;;  %1606 = vmatprep.mubr.bf16.mxu0 %v1264_v0  ;;  %1735 = vmatprep.mubr.bf16.mxu1 %v1266_v4  ;;  %v3043_v24 = vmul.f32 0.5, %v538_v11 }
 0x12f   : > { %v3029_v55 = vpop.f32.mrb[19].mxu1  ;;  %v2340_v5 = vpop.eup %2339  ;;  %v1087_v8 = vadd.f32 1.0, %v2338_v38  ;;  %v3045_v30 = vmul.f32 0.5, %v691_v41  ;;  %v906_v31 = vmul.f32 0.70710677, %v697_v58  ;;  %v546_v19 = vadd.f32 %v2965_v34, %v2892_v44  ;;  %1607 = vmatmul.mubr.bf16.vlgmr.msra.gmra.mrb[48].mxu0 %v1263_v18  ;;  %1736 = vmatmul.mubr.bf16.vlgmr.msra.gmra.mrb[48].mxu1 %v1265_v25 }
 0x130   : > { %v2342_v40 = vpop.eup %2341  ;;  %v1089_v32 = vadd.f32 1.0, %v2340_v5  ;;  %2355 = verf.f32 %v905_v23  ;;  %v699_v53 = vadd.f32 %v2967_v35, %v2894_v45  ;;  %v548_v34 = vadd.f32 %v2973_v39, %v2896_v46 }
 0x131   : > { %v2344_v10 = vpop.eup %2343  ;;  %v3068_v9 = vmul.f32 %v1086_v54, %v2953_v21  ;;  %v1088_v14 = vadd.f32 1.0, %v2342_v40  ;;  %2357 = verf.f32 %v904_v3  ;;  %v907_v18 = vmul.f32 0.70710677, %v546_v19 }
 0x132   : > { %v3055_v20 = vpop.f32.mrb[20].mxu0  ;;  %v3057_v50 = vpop.f32.mrb[20].mxu1  ;;  %v3075_v35 = vmul.f32 %v1087_v8, %v2977_v48  ;;  %v3077_v39 = vmul.f32 0.5, %v542_v15  ;;  %2359 = verf.f32 %v906_v31  ;;  %v909_v57 = vmul.f32 0.70710677, %v699_v53 }
 0x133   : > { %v3063_v11 = vpop.f32.mrb[21].mxu0  ;;  %v3065_v62 = vpop.f32.mrb[21].mxu1  ;;  %v3081_v21 = vmul.f32 0.5, %v695_v49  ;;  %v3083_v22 = vmul.f32 0.5, %v544_v52  ;;  %v908_v38 = vmul.f32 0.70710677, %v548_v34  ;;  %v701_v0 = vadd.f32 %v2975_v42, %v2898_v47 }
 0x134   : > { %v3070_v25 = vpop.f32.mrb[22].mxu0  ;;  %v3072_v41 = vpop.f32.mrb[22].mxu1  ;;  %v3090_v48 = vmul.f32 %v1089_v32, %v2982_v61  ;;  %v3092_v15 = vmul.f32 0.5, %v697_v58  ;;  %2361 = verf.f32 %v907_v18  ;;  %v552_v5 = vadd.f32 %v2997_v51, %v2892_v44 }
 0x135   : > { %v2346_v60 = vpop.eup %2345  ;;  %v3079_v33 = vpop.f32.mrb[23].mxu0  ;;  %v3097_v49 = vmul.f32 %v1088_v14, %v2991_v59  ;;  %v1090_v52 = vadd.f32 1.0, %v2344_v10  ;;  %2363 = verf.f32 %v909_v57  ;;  %v910_v23 = vmul.f32 0.70710677, %v701_v0 }
 0x136   : > { %v2348_v36 = vpop.eup %2347  ;;  %v3087_v4 = vpop.f32.mrb[23].mxu1  ;;  %v1091_v42 = vadd.f32 1.0, %v2346_v60  ;;  %2365 = verf.f32 %v908_v38  ;;  %v911_v3 = vmul.f32 0.70710677, %v552_v5  ;;  %v705_v58 = vadd.f32 %v2999_v12, %v2894_v45 }
 0x137   : > { %v2350_v54 = vpop.eup %2349  ;;  %v1093_v8 = vadd.f32 1.0, %v2348_v36  ;;  %2367 = verf.f32 %v910_v23  ;;  %v554_v51 = vadd.f32 %v3007_v16, %v2896_v46  ;;  %v3107_v14 = vmul.f32 0.5, %v546_v19 }
 0x138   : > { %v2352_v40 = vpop.eup %2351  ;;  %v1092_v61 = vadd.f32 1.0, %v2350_v54  ;;  %2369 = verf.f32 %v911_v3  ;;  %v707_v18 = vadd.f32 %v3009_v17, %v2898_v47  ;;  %v3116_v12 = vmul.f32 %v1090_v52, %v3004_v13 }
 0x139   : > { %v2354_v32 = vpop.eup %2353  ;;  %v1094_v10 = vadd.f32 1.0, %v2352_v40  ;;  %v3118_v16 = vmul.f32 0.5, %v699_v53  ;;  %v3120_v36 = vmul.f32 0.5, %v548_v34  ;;  %v913_v38 = vmul.f32 0.70710677, %v705_v58 }
 0x13a   : > { %v3103_v31 = vpop.f32.mrb[24].mxu0  ;;  %v3105_v59 = vpop.f32.mrb[24].mxu1  ;;  %v3127_v40 = vmul.f32 %v1091_v42, %v3011_v26  ;;  %v3130_v17 = vmul.f32 %v1093_v8, %v3038_v7  ;;  %v3132_v3 = vmul.f32 0.5, %v701_v0  ;;  %v3134_v13 = vmul.f32 0.5, %v552_v5 }
 0x13b   : > { %v3111_v60 = vpop.f32.mrb[25].mxu0  ;;  %v3113_v57 = vpop.f32.mrb[25].mxu1  ;;  %v1268_v26 = vpack.c.bf16 %v3041_v29, %v3002_v56  ;;  %v3146_v7 = vmul.f32 %v1094_v10, %v3045_v30  ;;  %v3148_v0 = vmul.f32 0.5, %v705_v58  ;;  %v914_v5 = vmul.f32 0.70710677, %v707_v18 }
 0x13c   : > { %3815 = vst [vmem:[#allocation5_spill] sm:$0xff] %v3113_v57  ;;  %v3122_v54 = vpop.f32.mrb[26].mxu0  ;;  %v3124_v19 = vpop.f32.mrb[26].mxu1  ;;  %v912_v57 = vmul.f32 0.70710677, %v554_v51  ;;  %v1270_v8 = vpack.c.bf16 %v3068_v9, %v3018_v28  ;;  %2371 = verf.f32 %v913_v38  ;;  %v1267_v30 = vpack.c.bf16 %v3023_v43, %v2986_v63 }
 0x13d   : > { %3816 = vst [vmem:[#allocation6_spill] sm:$0xff] %v3122_v54  ;;  %3817 = vst [vmem:[#allocation7_spill] sm:$0xff] %v3124_v19  ;;  %v2356_v23 = vpop.eup %2355  ;;  %v3136_v53 = vpop.f32.mrb[27].mxu0  ;;  %v3141_v54 = vmul.f32 %v1092_v61, %v3043_v24  ;;  %v1095_v19 = vadd.f32 1.0, %v2354_v32  ;;  %1614 = vmatprep.mubr.bf16.mxu0 %v1268_v26  ;;  %v556_v24 = vadd.f32 %v3013_v27, %v2892_v44  ;;  %v3156_v32 = vmul.f32 0.5, %v554_v51 }
 0x13e   : > { %v3138_v34 = vpop.f32.mrb[27].mxu1  ;;  %v2358_v52 = vpop.eup %2357  ;;  %v709_v61 = vadd.f32 %v3015_v2, %v2894_v45  ;;  %1743 = vmatprep.mubr.bf16.mxu1 %v1270_v8  ;;  %v1269_v28 = vpack.c.bf16 %v3036_v1, %v2989_v6  ;;  %2373 = verf.f32 %v912_v57  ;;  %1615 = vmatmul.mubr.bf16.gmra.mrb[52].mxu0 %v1267_v30  ;;  %v558_v63 = vadd.f32 %v3020_v37, %v2896_v46 }
 0x13f   : > { %3818 = vst [vmem:[#allocation8_spill] sm:$0xff] %v3138_v34  ;;  %v2360_v42 = vpop.eup %2359  ;;  %v1097_v34 = vadd.f32 1.0, %v2356_v23  ;;  %v1096_v29 = vadd.f32 1.0, %v2358_v52  ;;  %v3163_v58 = vmul.f32 %v1095_v19, %v3077_v39  ;;  %v915_v27 = vmul.f32 0.70710677, %v556_v24 }
 0x140   : > { %v2362_v56 = vpop.eup %2361  ;;  %v1098_v10 = vadd.f32 1.0, %v2360_v42  ;;  %v3167_v23 = vmul.f32 0.5, %v707_v18  ;;  %2375 = verf.f32 %v914_v5  ;;  %v917_v51 = vmul.f32 0.70710677, %v709_v61  ;;  %1744 = vmatmul.mubr.bf16.gmra.mrb[52].mxu1 %v1269_v28 }
 0x141   : > { %v2364_v9 = vpop.eup %2363  ;;  %v3176_v39 = vmul.f32 %v1097_v34, %v3081_v21  ;;  %2377 = verf.f32 %v915_v27  ;;  %v711_v18 = vadd.f32 %v3029_v55, %v2898_v47  ;;  %v562_v57 = vadd.f32 %v3055_v20, %v2892_v44 }
 0x142   : > { %v3165_v38 = vpop.f32.mrb[28].mxu0  ;;  %v2366_v2 = vpop.eup %2365  ;;  %v3187_v26 = vmul.f32 %v1096_v29, %v3083_v22  ;;  %v1099_v42 = vadd.f32 1.0, %v2362_v56  ;;  %v1101_v5 = vadd.f32 1.0, %v2364_v9  ;;  %2379 = verf.f32 %v917_v51 }
 0x143   : > { %v3171_v6 = vpop.f32.mrb[28].mxu1  ;;  %v3173_v43 = vpop.f32.mrb[29].mxu0  ;;  %v3194_v55 = vmul.f32 %v1098_v10, %v3092_v15  ;;  %v1100_v8 = vadd.f32 1.0, %v2366_v2  ;;  %v916_v20 = vmul.f32 0.70710677, %v558_v63  ;;  %v3196_v27 = vmul.f32 0.5, %v556_v24 }
 0x144   : > { %v2368_v1 = vpop.eup %2367  ;;  %v3182_v19 = vpop.f32.mrb[29].mxu1  ;;  %v918_v30 = vmul.f32 0.70710677, %v711_v18  ;;  %v715_v22 = vadd.f32 %v3057_v50, %v2894_v45  ;;  %v564_v9 = vadd.f32 %v3063_v11, %v2896_v46  ;;  %v717_v15 = vadd.f32 %v3065_v62, %v2898_v47 }
 0x145   : > { %v3184_v52 = vpop.f32.mrb[30].mxu0  ;;  %v2370_v37 = vpop.eup %2369  ;;  %v1102_v28 = vadd.f32 1.0, %v2368_v1  ;;  %2381 = verf.f32 %v916_v20  ;;  %v3207_v10 = vmul.f32 %v1099_v42, %v3107_v14  ;;  %v3210_v24 = vmul.f32 %v1101_v5, %v3118_v16 }
 0x146   : > { %3819 = vst [vmem:[#allocation9_spill] sm:$0xff] %v3184_v52  ;;  %v3189_v21 = vpop.f32.mrb[30].mxu1  ;;  %v3191_v34 = vpop.f32.mrb[31].mxu0  ;;  %v919_v52 = vmul.f32 0.70710677, %v562_v57  ;;  %v1103_v29 = vadd.f32 1.0, %v2370_v37  ;;  %v3215_v1 = vmul.f32 %v1100_v8, %v3120_v36  ;;  %2383 = verf.f32 %v918_v30 }
 0x147   : > { %v3200_v56 = vpop.f32.mrb[31].mxu1  ;;  %v3212_v2 = vmul.f32 0.5, %v709_v61  ;;  %v921_v51 = vmul.f32 0.70710677, %v715_v22  ;;  %v2372_v50 = vpop.eup %2371  ;;  %v3217_v37 = vmul.f32 0.5, %v558_v63  ;;  %v3224_v14 = vmul.f32 %v1102_v28, %v3132_v3 }
 0x148   : > { %v920_v11 = vmul.f32 0.70710677, %v564_v9  ;;  %v3226_v16 = vmul.f32 0.5, %v711_v18  ;;  %v3228_v61 = vmul.f32 0.5, %v562_v57  ;;  %2385 = verf.f32 %v919_v52  ;;  %v2374_v63 = vpop.eup %2373 }
 0x149   : > { %v3235_v5 = vmul.f32 %v1103_v29, %v3134_v13  ;;  %2387 = verf.f32 %v921_v51  ;;  %v922_v8 = vmul.f32 0.70710677, %v717_v15  ;;  %v1272_v30 = vpack.c.bf16 %v3141_v54, %v3097_v49 }
 0x14a   : > { %v3219_v20 = vpop.f32.mrb[32].mxu0  ;;  %v3221_v62 = vpop.f32.mrb[32].mxu1  ;;  %v1105_v28 = vadd.f32 1.0, %v2372_v50  ;;  %v1274_v52 = vpack.c.bf16 %v3146_v7, %v3116_v12  ;;  %v719_v13 = vadd.f32 %v3072_v41, %v2894_v45  ;;  %2389 = verf.f32 %v920_v11 }
 0x14b   : > { %v3230_v42 = vpop.f32.mrb[33].mxu0  ;;  %v3232_v36 = vpop.f32.mrb[33].mxu1  ;;  %1622 = vmatprep.mubr.bf16.mxu0 %v1272_v30  ;;  %v1271_v54 = vpack.c.bf16 %v3127_v40, %v3075_v35  ;;  %v1273_v50 = vpack.c.bf16 %v3130_v17, %v3090_v48  ;;  %v568_v12 = vadd.f32 %v3079_v33, %v2896_v46  ;;  %v1104_v7 = vadd.f32 1.0, %v2374_v63 }
 0x14c   : > { %3820 = vst [vmem:[#allocation10_spill] sm:$0xff] %v3232_v36  ;;  %v3239_v3 = vpop.f32.mrb[34].mxu0  ;;  %v3241_v18 = vpop.f32.mrb[34].mxu1  ;;  %v566_v36 = vadd.f32 %v3070_v25, %v2892_v44  ;;  %2391 = verf.f32 %v922_v8  ;;  %1751 = vmatprep.mubr.bf16.mxu1 %v1274_v52  ;;  %v3261_v11 = vmul.f32 0.5, %v564_v9  ;;  %v925_v30 = vmul.f32 0.70710677, %v719_v13 }
 0x14d   : > { %3821 = vst [vmem:[#allocation11_spill] sm:$0xff] %v3241_v18  ;;  %v2376_v57 = vpop.eup %2375  ;;  %v3249_v29 = vpop.f32.mrb[35].mxu0  ;;  %v3259_v18 = vmul.f32 0.5, %v715_v22  ;;  %1623 = vmatmul.mubr.bf16.gmra.mrb[56].mxu0 %v1271_v54  ;;  %1752 = vmatmul.mubr.bf16.gmra.mrb[56].mxu1 %v1273_v50  ;;  %v924_v35 = vmul.f32 0.70710677, %v568_v12  ;;  %v721_v48 = vadd.f32 %v3087_v4, %v2898_v47  ;;  %v572_v33 = vadd.f32 %v3103_v31, %v2892_v44 }
 0x14e   : > { %3822 = vst [vmem:[#allocation12_spill] sm:$0xff] %v3249_v29  ;;  %v3251_v51 = vpop.f32.mrb[35].mxu1  ;;  %v2378_v49 = vpop.eup %2377  ;;  %v923_v41 = vmul.f32 0.70710677, %v566_v36  ;;  %v3268_v17 = vmul.f32 %v1105_v28, %v3148_v0  ;;  %v725_v9 = vadd.f32 %v3105_v59, %v2894_v45  ;;  %v3279_v4 = vmul.f32 0.5, %v717_v15 }
 0x14f   : > { %3823 = vst [vmem:[#allocation13_spill] sm:$0xff] %v3251_v51  ;;  %v2380_v25 = vpop.eup %2379  ;;  %v1106_v51 = vadd.f32 1.0, %v2376_v57  ;;  %v1107_v29 = vadd.f32 1.0, %v2378_v49  ;;  %v3277_v57 = vmul.f32 %v1104_v7, %v3156_v32  ;;  %v926_v52 = vmul.f32 0.70710677, %v721_v48 }
 0x150   : > { %2393 = verf.f32 %v923_v41  ;;  %v2382_v40 = vpop.eup %2381  ;;  %v1109_v22 = vadd.f32 1.0, %v2380_v25  ;;  %v3283_v31 = vadd.f32 %v3111_v60, %v2896_v46  ;;  %v3292_v54 = vmul.f32 0.5, %v566_v36 }
 0x151   : > { %2395 = verf.f32 %v925_v30  ;;  %v2384_v49 = vpop.eup %2383  ;;  %v3290_v59 = vmul.f32 %v1106_v51, %v3167_v23  ;;  %v3294_v50 = vmul.f32 0.5, %v719_v13  ;;  %v927_v32 = vmul.f32 0.70710677, %v572_v33 }
 0x152   : > { %v3272_v63 = vpop.f32.mrb[36].mxu0  ;;  %v3274_v8 = vpop.f32.mrb[36].mxu1  ;;  %v3299_v7 = vmul.f32 %v1107_v29, %v3196_v27  ;;  %v1108_v60 = vadd.f32 1.0, %v2382_v40  ;;  %v3301_v41 = vmul.f32 0.5, %v568_v12  ;;  %2397 = verf.f32 %v924_v35 }
 0x153   : > { %v3285_v0 = vpop.f32.mrb[37].mxu0  ;;  %v3287_v28 = vpop.f32.mrb[37].mxu1  ;;  %v3308_v36 = vmul.f32 %v1109_v22, %v3212_v2  ;;  %v3310_v13 = vmul.f32 0.5, %v721_v48  ;;  %2399 = verf.f32 %v926_v52  ;;  %v929_v51 = vmul.f32 0.70710677, %v725_v9 }
 0x154   : > { %3824 = vst [vmem:[#allocation14_spill] sm:$0xff] %v3285_v0  ;;  %3825 = vst [vmem:[#allocation15_spill] sm:$0xff] %v3287_v28  ;;  %v3296_v15 = vpop.f32.mrb[38].mxu0  ;;  %v2386_v25 = vpop.eup %2385  ;;  %v1110_v27 = vadd.f32 1.0, %v2384_v49  ;;  %v3314_v29 = vmul.f32 0.5, %v572_v33  ;;  %2401 = verf.f32 %v927_v32  ;;  %v3317_v40 = vmul.f32 0.5, %v725_v9 }
 0x155   : > { %3826 = vst [vmem:[#allocation16_spill] sm:$0xff] %v3296_v15  ;;  %v3303_v30 = vpop.f32.mrb[38].mxu1  ;;  %v3305_v28 = vpop.f32.mrb[39].mxu0  ;;  %v928_v12 = vmul.f32 0.70710677, %v3283_v31  ;;  %v1276_v2 = vpack.c.bf16 %v3215_v1, %v3187_v26  ;;  %v1278_v48 = vpack.c.bf16 %v3224_v14, %v3194_v55  ;;  %v3326_v52 = vmul.f32 %v1108_v60, %v3217_v37  ;;  %v3831_v32 = vld [vmem:[#allocation6_spill] sm:$0xff] }
 0x156   : > { %3827 = vst [vmem:[#allocation17_spill] sm:$0xff] %v3303_v30  ;;  %3828 = vst [vmem:[#allocation18_spill] sm:$0xff] %v3305_v28  ;;  %v2388_v23 = vpop.eup %2387  ;;  %v3312_v15 = vpop.f32.mrb[39].mxu1  ;;  %v3830_v28 = vld [vmem:[#allocation5_spill] sm:$0xff]  ;;  %v1111_v33 = vadd.f32 1.0, %v2386_v25  ;;  %2403 = verf.f32 %v929_v51  ;;  %v1275_v26 = vpack.c.bf16 %v3207_v10, %v3163_v58  ;;  %v1277_v60 = vpack.c.bf16 %v3210_v24, %v3176_v39  ;;  %v3834_v24 = vld [vmem:[#allocation8_spill] sm:$0xff] }
 0x157   : > { %3829 = vst [vmem:[#allocation19_spill] sm:$0xff] %v3312_v15  ;;  %v2390_v35 = vpop.eup %2389  ;;  %v727_v30 = vadd.f32 %v3830_v28, %v2898_v47  ;;  %v1113_v49 = vadd.f32 1.0, %v2388_v23  ;;  %v576_v15 = vadd.f32 %v3831_v32, %v2892_v44  ;;  %1630 = vmatprep.mubr.bf16.mxu0 %v1276_v2  ;;  %1759 = vmatprep.mubr.bf16.mxu1 %v1278_v48  ;;  %v3832_v28 = vld [vmem:[#allocation7_spill] sm:$0xff]  ;;  %2405 = verf.f32 %v928_v12 }
 0x158   : > { %v2392_v22 = vpop.eup %2391  ;;  %v729_v0 = vadd.f32 %v3832_v28, %v2894_v45  ;;  %v1112_v14 = vadd.f32 1.0, %v2390_v35  ;;  %v3345_v48 = vmul.f32 %v1110_v27, %v3226_v16  ;;  %1631 = vmatmul.mubr.bf16.gmra.mrb[60].mxu0 %v1275_v26  ;;  %1760 = vmatmul.mubr.bf16.gmra.mrb[60].mxu1 %v1277_v60  ;;  %v578_v39 = vadd.f32 %v3136_v53, %v2896_v46 }
 0x159   : > { %v930_v9 = vmul.f32 0.70710677, %v727_v30  ;;  %v931_v25 = vmul.f32 0.70710677, %v576_v15  ;;  %v1114_v58 = vadd.f32 1.0, %v2392_v22  ;;  %v731_v28 = vadd.f32 %v3834_v24, %v2898_v47 }
 0x15a   : > { %v3334_v55 = vpop.f32.mrb[40].mxu0  ;;  %v3336_v1 = vpop.f32.mrb[40].mxu1  ;;  %v933_v10 = vmul.f32 0.70710677, %v729_v0  ;;  %v3360_v22 = vmul.f32 0.5, %v3283_v31  ;;  %v3368_v53 = vmul.f32 %v1113_v49, %v3259_v18  ;;  %v3376_v31 = vmul.f32 0.5, %v727_v30 }
 0x15b   : > { %v2394_v37 = vpop.eup %2393  ;;  %v3340_v23 = vpop.f32.mrb[41].mxu0  ;;  %2407 = verf.f32 %v930_v9  ;;  %v582_v9 = vadd.f32 %v3165_v38, %v2892_v44  ;;  %v932_v60 = vmul.f32 0.70710677, %v578_v39  ;;  %v934_v38 = vmul.f32 0.70710677, %v731_v28 }
 0x15c   : > { %v3342_v51 = vpop.f32.mrb[41].mxu1  ;;  %v2396_v2 = vpop.eup %2395  ;;  %v1115_v12 = vadd.f32 1.0, %v2394_v37  ;;  %2409 = verf.f32 %v931_v25  ;;  %v3365_v37 = vmul.f32 %v1111_v33, %v3228_v61  ;;  %v3371_v25 = vmul.f32 %v1112_v14, %v3261_v11 }
 0x15d   : > { %3833 = vst [vmem:[#allocation5_spill] sm:$0xff] %v3342_v51  ;;  %v3347_v32 = vpop.f32.mrb[42].mxu0  ;;  %v3349_v35 = vpop.f32.mrb[42].mxu1  ;;  %v1117_v27 = vadd.f32 1.0, %v2396_v2  ;;  %2411 = verf.f32 %v933_v10  ;;  %v3374_v2 = vmul.f32 %v1114_v58, %v3279_v4  ;;  %v3378_v10 = vmul.f32 0.5, %v576_v15 }
 0x15e   : > { %v3355_v51 = vpop.f32.mrb[43].mxu0  ;;  %v3357_v16 = vpop.f32.mrb[43].mxu1  ;;  %v3381_v61 = vmul.f32 %v1115_v12, %v3292_v54  ;;  %v3383_v33 = vmul.f32 0.5, %v729_v0  ;;  %v935_v18 = vmul.f32 0.70710677, %v582_v9  ;;  %v735_v11 = vadd.f32 %v3171_v6, %v2894_v45 }
 0x15f   : > { %3835 = vst [vmem:[#allocation6_spill] sm:$0xff] %v3357_v16  ;;  %v2398_v26 = vpop.eup %2397  ;;  %v3388_v49 = vmul.f32 %v1117_v27, %v3294_v50  ;;  %2413 = verf.f32 %v932_v60  ;;  %v584_v15 = vadd.f32 %v3173_v43, %v2896_v46  ;;  %v3396_v58 = vmul.f32 0.5, %v578_v39 }
 0x160   : > { %v2400_v24 = vpop.eup %2399  ;;  %v1116_v4 = vadd.f32 1.0, %v2398_v26  ;;  %2415 = verf.f32 %v934_v38  ;;  %v937_v0 = vmul.f32 0.70710677, %v735_v11  ;;  %v3402_v26 = vmul.f32 0.5, %v731_v28 }
 0x161   : > { %v2402_v16 = vpop.eup %2401  ;;  %v1118_v54 = vadd.f32 1.0, %v2400_v24  ;;  %2417 = verf.f32 %v935_v18  ;;  %v936_v60 = vmul.f32 0.70710677, %v584_v15  ;;  %v737_v39 = vadd.f32 %v3182_v19, %v2898_v47 }
 0x162   : > { %v3392_v30 = vpop.f32.mrb[44].mxu0  ;;  %v3394_v14 = vpop.f32.mrb[44].mxu1  ;;  %v1119_v27 = vadd.f32 1.0, %v2402_v16  ;;  %2419 = verf.f32 %v937_v0  ;;  %v1280_v24 = vpack.c.bf16 %v3326_v52, %v3277_v57  ;;  %v1282_v38 = vpack.c.bf16 %v3345_v48, %v3290_v59  ;;  %v3843_v0 = vld [vmem:[#allocation9_spill] sm:$0xff] }
 0x163   : > { %3836 = vst [vmem:[#allocation7_spill] sm:$0xff] %v3392_v30  ;;  %3837 = vst [vmem:[#allocation8_spill] sm:$0xff] %v3394_v14  ;;  %v3398_v12 = vpop.f32.mrb[45].mxu0  ;;  %v3400_v6 = vpop.f32.mrb[45].mxu1  ;;  %v739_v19 = vadd.f32 %v3189_v21, %v2894_v45  ;;  %v3428_v52 = vmul.f32 %v1118_v54, %v3310_v13  ;;  %v938_v48 = vmul.f32 0.70710677, %v737_v39  ;;  %2421 = verf.f32 %v936_v60 }
 0x164   : > { %3838 = vst [vmem:[#allocation20_spill] sm:$0xff] %v3400_v6  ;;  %v2404_v50 = vpop.eup %2403  ;;  %v3404_v43 = vpop.f32.mrb[46].mxu0  ;;  %v586_v6 = vadd.f32 %v3843_v0, %v2892_v44  ;;  %1638 = vmatprep.mubr.bf16.mxu0 %v1280_v24  ;;  %1767 = vmatprep.mubr.bf16.mxu1 %v1282_v38  ;;  %v3448_v60 = vmul.f32 0.5, %v584_v15  ;;  %v3455_v38 = vmul.f32 0.5, %v737_v39 }
 0x165   : > { %3839 = vst [vmem:[#allocation21_spill] sm:$0xff] %v3404_v43  ;;  %v3406_v30 = vpop.f32.mrb[46].mxu1  ;;  %v2406_v14 = vpop.eup %2405  ;;  %v3419_v43 = vmul.f32 %v1116_v4, %v3301_v41  ;;  %v1121_v59 = vadd.f32 1.0, %v2404_v50  ;;  %v1279_v41 = vpack.c.bf16 %v3299_v7, %v3235_v5  ;;  %2423 = verf.f32 %v938_v48 }
 0x166   : > { %3840 = vst [vmem:[#allocation22_spill] sm:$0xff] %v3406_v30  ;;  %v3414_v16 = vpop.f32.mrb[47].mxu0  ;;  %v3416_v28 = vpop.f32.mrb[47].mxu1  ;;  %v3421_v30 = vmul.f32 0.5, %v582_v9  ;;  %v3433_v9 = vmul.f32 %v1119_v27, %v3314_v29  ;;  %v939_v0 = vmul.f32 0.70710677, %v586_v6  ;;  %v1281_v50 = vpack.c.bf16 %v3308_v36, %v3268_v17 }
 0x167   : > { %3841 = vst [vmem:[#allocation23_spill] sm:$0xff] %v3414_v16  ;;  %3842 = vst [vmem:[#allocation24_spill] sm:$0xff] %v3416_v28  ;;  %v2408_v18 = vpop.eup %2407  ;;  %v3435_v28 = vmul.f32 0.5, %v735_v11  ;;  %v1120_v21 = vadd.f32 1.0, %v2406_v14  ;;  %v941_v13 = vmul.f32 0.70710677, %v739_v19  ;;  %1639 = vmatmul.mubr.bf16.gmra.mrb[64].mxu0 %v1279_v41  ;;  %v588_v5 = vadd.f32 %v3191_v34, %v2896_v46 }
 0x168   : > { %v2410_v57 = vpop.eup %2409  ;;  %v1122_v16 = vadd.f32 1.0, %v2408_v18  ;;  %2425 = verf.f32 %v939_v0  ;;  %v741_v29 = vadd.f32 %v3200_v56, %v2898_v47  ;;  %v592_v11 = vadd.f32 %v3219_v20, %v2892_v44  ;;  %1768 = vmatmul.mubr.bf16.gmra.mrb[64].mxu1 %v1281_v50  ;;  %v3844_v41 = vld [vmem:[#allocation10_spill] sm:$0xff] }
 0x169   : > { %v2412_v4 = vpop.eup %2411  ;;  %v1123_v54 = vadd.f32 1.0, %v2410_v57  ;;  %2427 = verf.f32 %v941_v13  ;;  %v3446_v27 = vmul.f32 %v1121_v59, %v3317_v40  ;;  %v940_v24 = vmul.f32 0.70710677, %v588_v5 }
 0x16a   : > { %v1125_v7 = vadd.f32 1.0, %v2412_v4  ;;  %v2414_v14 = vpop.eup %2413  ;;  %v745_v17 = vadd.f32 %v3221_v62, %v2894_v45  ;;  %v3453_v36 = vmul.f32 %v1120_v21, %v3360_v22  ;;  %v3457_v56 = vmul.f32 0.5, %v586_v6 }
 0x16b   : > { %v2416_v34 = vpop.eup %2415  ;;  %v942_v20 = vmul.f32 0.70710677, %v741_v29  ;;  %v3460_v40 = vmul.f32 %v1122_v16, %v3376_v31  ;;  %v3462_v15 = vmul.f32 0.5, %v739_v19  ;;  %2429 = verf.f32 %v940_v24 }
 0x16c   : > { %v2418_v18 = vpop.eup %2417  ;;  %v943_v57 = vmul.f32 0.70710677, %v592_v11  ;;  %v3465_v62 = vmul.f32 %v1123_v54, %v3378_v10  ;;  %v3468_v22 = vmul.f32 %v1125_v7, %v3383_v33  ;;  %v945_v39 = vmul.f32 0.70710677, %v745_v17 }
 0x16d   : > { %v2420_v59 = vpop.eup %2419  ;;  %2431 = verf.f32 %v942_v20  ;;  %v1124_v6 = vadd.f32 1.0, %v2414_v14  ;;  %v1126_v48 = vadd.f32 1.0, %v2416_v34  ;;  %v594_v31 = vadd.f32 %v3230_v42, %v2896_v46 }
 0x16e   : > { %2433 = verf.f32 %v943_v57  ;;  %v1127_v16 = vadd.f32 1.0, %v2418_v18  ;;  %v3472_v19 = vmul.f32 0.5, %v588_v5  ;;  %v747_v4 = vadd.f32 %v3844_v41, %v2898_v47  ;;  %v2422_v0 = vpop.eup %2421 }
 0x16f   : > { %v1284_v10 = vpack.c.bf16 %v3419_v43, %v3371_v25  ;;  %v1129_v33 = vadd.f32 1.0, %v2420_v59  ;;  %v3478_v21 = vmul.f32 0.5, %v741_v29  ;;  %v944_v13 = vmul.f32 0.70710677, %v594_v31  ;;  %v2424_v50 = vpop.eup %2423  ;;  %v3845_v29 = vld [vmem:[#allocation11_spill] sm:$0xff] }
 0x170   : > { %v1286_v54 = vpack.c.bf16 %v3428_v52, %v3374_v2  ;;  %v3482_v7 = vmul.f32 0.5, %v592_v11  ;;  %2435 = verf.f32 %v945_v39  ;;  %v946_v42 = vmul.f32 0.70710677, %v747_v4  ;;  %v3847_v39 = vld [vmem:[#allocation13_spill] sm:$0xff] }
 0x171   : > { %1646 = vmatprep.mubr.bf16.mxu0 %v1284_v10  ;;  %v596_v5 = vadd.f32 %v3239_v3, %v2892_v44  ;;  %v1220_v25 = vmul.f32 %v1124_v6, %v3396_v58  ;;  %v1222_v43 = vmul.f32 %v1126_v48, %v3402_v26  ;;  %v749_v24 = vadd.f32 %v3845_v29, %v2894_v45 }
 0x172   : > { %v2426_v14 = vpop.eup %2425  ;;  %1775 = vmatprep.mubr.bf16.mxu1 %v1286_v54  ;;  %v1283_v2 = vpack.c.bf16 %v3381_v61, %v3365_v37  ;;  %v3493_v11 = vmul.f32 %v1127_v16, %v3421_v30  ;;  %v3495_v34 = vmul.f32 0.5, %v745_v17  ;;  %2437 = verf.f32 %v944_v13  ;;  %v3846_v61 = vld [vmem:[#allocation12_spill] sm:$0xff] }
 0x173   : > { %v2428_v52 = vpop.eup %2427  ;;  %v947_v3 = vmul.f32 0.70710677, %v596_v5  ;;  %v3498_v20 = vmul.f32 %v1129_v33, %v3435_v28  ;;  %v1128_v58 = vadd.f32 1.0, %v2422_v0  ;;  %2439 = verf.f32 %v946_v42 }
 0x174   : > { %v949_v26 = vmul.f32 0.70710677, %v749_v24  ;;  %1647 = vmatmul.mubr.bf16.gmra.mrb[68].mxu0 %v1283_v2  ;;  %v1130_v18 = vadd.f32 1.0, %v2424_v50  ;;  %v1131_v57 = vadd.f32 1.0, %v2426_v14  ;;  %v1285_v37 = vpack.c.bf16 %v3388_v49, %v3368_v53 }
 0x175   : > { %v598_v30 = vadd.f32 %v3846_v61, %v2896_v46  ;;  %v2430_v59 = vpop.eup %2429  ;;  %v1133_v17 = vadd.f32 1.0, %v2428_v52  ;;  %2441 = verf.f32 %v947_v3  ;;  %v751_v6 = vadd.f32 %v3847_v39, %v2898_v47 }
 0x176   : > { %v602_v28 = vadd.f32 %v3272_v63, %v2892_v44  ;;  %v3508_v16 = vmul.f32 0.5, %v594_v31  ;;  %2443 = verf.f32 %v949_v26  ;;  %1776 = vmatmul.mubr.bf16.gmra.mrb[68].mxu1 %v1285_v37  ;;  %v755_v53 = vadd.f32 %v3274_v8, %v2894_v45 }
 0x177   : > { %v2432_v48 = vpop.eup %2431  ;;  %v948_v41 = vmul.f32 0.70710677, %v598_v30  ;;  %v3513_v10 = vmul.f32 %v1128_v58, %v3448_v60  ;;  %v850_v0 = vmul.f32 0.5, %v747_v4  ;;  %v3515_v33 = vmul.f32 0.5, %v596_v5 }
 0x178   : > { %v2434_v49 = vpop.eup %2433  ;;  %v950_v13 = vmul.f32 0.70710677, %v751_v6  ;;  %v3518_v54 = vmul.f32 %v1130_v18, %v3455_v38  ;;  %v1132_v63 = vadd.f32 1.0, %v2430_v59  ;;  %v3520_v31 = vmul.f32 0.5, %v749_v24  ;;  %v3848_v38 = vld [vmem:[#allocation14_spill] sm:$0xff]  ;;  %v3849_v24 = vld [vmem:[#allocation15_spill] sm:$0xff] }
 0x179   : > { %2445 = verf.f32 %v948_v41  ;;  %v3523_v50 = vmul.f32 %v1131_v57, %v3457_v56  ;;  %v3526_v8 = vmul.f32 %v1133_v17, %v3462_v15  ;;  %v3528_v42 = vmul.f32 0.5, %v598_v30  ;;  %v3850_v59 = vld [vmem:[#allocation16_spill] sm:$0xff] }
 0x17a   : > { %v951_v60 = vmul.f32 0.70710677, %v602_v28  ;;  %v2436_v4 = vpop.eup %2435  ;;  %v1134_v5 = vadd.f32 1.0, %v2432_v48  ;;  %v1135_v14 = vadd.f32 1.0, %v2434_v49  ;;  %v953_v29 = vmul.f32 0.70710677, %v755_v53 }
 0x17b   : > { %v604_v2 = vadd.f32 %v3848_v38, %v2896_v46  ;;  %2447 = verf.f32 %v950_v13  ;;  %v757_v52 = vadd.f32 %v3849_v24, %v2898_v47  ;;  %v1288_v56 = vpack.c.bf16 %v1220_v25, %v3453_v36 }
 0x17c   : > { %v1290_v3 = vpack.c.bf16 %v1222_v43, %v3460_v40  ;;  %v2438_v15 = vpop.eup %2437  ;;  %v3537_v58 = vmul.f32 %v1132_v63, %v3472_v19  ;;  %v3539_v26 = vmul.f32 0.5, %v751_v6  ;;  %v3541_v18 = vmul.f32 0.5, %v602_v28  ;;  %v3851_v19 = vld [vmem:[#allocation17_spill] sm:$0xff]  ;;  %v3853_v63 = vld [vmem:[#allocation19_spill] sm:$0xff] }
 0x17d   : > { %v952_v57 = vmul.f32 0.70710677, %v604_v2  ;;  %v2440_v37 = vpop.eup %2439  ;;  %v1137_v61 = vadd.f32 1.0, %v2436_v4  ;;  %2449 = verf.f32 %v951_v60  ;;  %v954_v30 = vmul.f32 0.70710677, %v757_v52  ;;  %1654 = vmatprep.mubr.bf16.mxu0 %v1288_v56 }
 0x17e   : > { %1783 = vmatprep.mubr.bf16.mxu1 %v1290_v3  ;;  %v606_v36 = vadd.f32 %v3850_v59, %v2892_v44  ;;  %v1230_v40 = vmul.f32 %v1134_v5, %v3478_v21  ;;  %2451 = verf.f32 %v953_v29  ;;  %v759_v25 = vadd.f32 %v3851_v19, %v2894_v45 }
 0x17f   : > { %v1287_v43 = vpack.c.bf16 %v3465_v62, %v3433_v9  ;;  %v2442_v17 = vpop.eup %2441  ;;  %v3551_v39 = vmul.f32 %v1135_v14, %v3482_v7  ;;  %v1136_v6 = vadd.f32 1.0, %v2438_v15  ;;  %v3553_v28 = vmul.f32 0.5, %v755_v53  ;;  %v3852_v62 = vld [vmem:[#allocation18_spill] sm:$0xff] }
 0x180   : > { %2453 = verf.f32 %v952_v57  ;;  %v2444_v48 = vpop.eup %2443  ;;  %v1138_v41 = vadd.f32 1.0, %v2440_v37  ;;  %v955_v49 = vmul.f32 0.70710677, %v606_v36  ;;  %v957_v21 = vmul.f32 0.70710677, %v759_v25 }
 0x181   : > { %2455 = verf.f32 %v954_v30  ;;  %1655 = vmatmul.mubr.bf16.gmra.mrb[72].mxu0 %v1287_v43  ;;  %v3556_v13 = vmul.f32 %v1137_v61, %v3495_v34  ;;  %v1289_v9 = vpack.c.bf16 %v3468_v22, %v3446_v27  ;;  %v608_v7 = vadd.f32 %v3852_v62, %v2896_v46 }
 0x182   : > { %v761_v53 = vadd.f32 %v3853_v63, %v2898_v47  ;;  %v1139_v4 = vadd.f32 1.0, %v2442_v17  ;;  %2457 = verf.f32 %v955_v49  ;;  %v612_v5 = vadd.f32 %v3334_v55, %v2892_v44 }
 0x183   : > { %v2446_v60 = vpop.eup %2445  ;;  %v765_v14 = vadd.f32 %v3336_v1, %v2894_v45  ;;  %v1141_v34 = vadd.f32 1.0, %v2444_v48  ;;  %v3568_v29 = vmul.f32 0.5, %v604_v2  ;;  %2459 = verf.f32 %v957_v21  ;;  %1784 = vmatmul.mubr.bf16.gmra.mrb[72].mxu1 %v1289_v9 }
 0x184   : > { %v956_v27 = vmul.f32 0.70710677, %v608_v7  ;;  %v3571_v22 = vmul.f32 %v1136_v6, %v3508_v16  ;;  %v3573_v38 = vmul.f32 %v1138_v41, %v850_v0  ;;  %v3575_v24 = vmul.f32 0.5, %v757_v52 }
 0x185   : > { %v958_v56 = vmul.f32 0.70710677, %v761_v53  ;;  %v2448_v3 = vpop.eup %2447  ;;  %v1140_v15 = vadd.f32 1.0, %v2446_v60  ;;  %v3577_v55 = vmul.f32 0.5, %v606_v36  ;;  %v959_v1 = vmul.f32 0.70710677, %v612_v5 }
 0x186   : > { %2461 = verf.f32 %v956_v27  ;;  %v3580_v2 = vmul.f32 %v1139_v4, %v3515_v33  ;;  %v3582_v57 = vmul.f32 0.5, %v759_v25  ;;  %v961_v37 = vmul.f32 0.70710677, %v765_v14  ;;  %v3854_v36 = vld [vmem:[#allocation5_spill] sm:$0xff] }
 0x187   : > { %2463 = verf.f32 %v958_v56  ;;  %v2450_v16 = vpop.eup %2449  ;;  %v3585_v0 = vmul.f32 %v1141_v34, %v3520_v31  ;;  %v3587_v52 = vmul.f32 0.5, %v608_v7  ;;  %v614_v61 = vadd.f32 %v3340_v23, %v2896_v46  ;;  %v3856_v34 = vld [vmem:[#allocation7_spill] sm:$0xff] }
 0x188   : > { %2465 = verf.f32 %v959_v1  ;;  %v2452_v30 = vpop.eup %2451  ;;  %v1142_v59 = vadd.f32 1.0, %v2448_v3  ;;  %v767_v33 = vadd.f32 %v3854_v36, %v2898_v47  ;;  %v1292_v19 = vpack.c.bf16 %v3537_v58, %v3513_v10 }
 0x189   : > { %v1294_v25 = vpack.c.bf16 %v1230_v40, %v3518_v54  ;;  %v3597_v31 = vmul.f32 %v1140_v15, %v3528_v42  ;;  %v3599_v17 = vmul.f32 0.5, %v761_v53  ;;  %v3601_v6 = vmul.f32 0.5, %v612_v5 }
 0x18a   : > { %v2454_v43 = vpop.eup %2453  ;;  %v960_v48 = vmul.f32 0.70710677, %v614_v61  ;;  %v1143_v41 = vadd.f32 1.0, %v2450_v16  ;;  %2467 = verf.f32 %v961_v37  ;;  %v962_v49 = vmul.f32 0.70710677, %v767_v33  ;;  %1662 = vmatprep.mubr.bf16.mxu0 %v1292_v19 }
 0x18b   : > { %v2456_v23 = vpop.eup %2455  ;;  %1791 = vmatprep.mubr.bf16.mxu1 %v1294_v25  ;;  %v616_v10 = vadd.f32 %v3347_v32, %v2892_v44  ;;  %v1145_v58 = vadd.f32 1.0, %v2452_v30  ;;  %v769_v54 = vadd.f32 %v3349_v35, %v2894_v45  ;;  %v1291_v42 = vpack.c.bf16 %v3523_v50, %v3493_v11  ;;  %v3855_v50 = vld [vmem:[#allocation6_spill] sm:$0xff] }
 0x18c   : > { %2469 = verf.f32 %v960_v48  ;;  %v2458_v40 = vpop.eup %2457  ;;  %v1238_v21 = vmul.f32 %v1142_v59, %v3539_v26  ;;  %v3610_v9 = vmul.f32 0.5, %v765_v14  ;;  %v1144_v63 = vadd.f32 1.0, %v2454_v43 }
 0x18d   : > { %2471 = verf.f32 %v962_v49  ;;  %v963_v62 = vmul.f32 0.70710677, %v616_v10  ;;  %v2460_v7 = vpop.eup %2459  ;;  %v1146_v53 = vadd.f32 1.0, %v2456_v23  ;;  %v965_v60 = vmul.f32 0.70710677, %v769_v54  ;;  %1663 = vmatmul.mubr.bf16.gmra.mrb[76].mxu0 %v1291_v42 }
 0x18e   : > { %v1293_v32 = vpack.c.bf16 %v3526_v8, %v3498_v20  ;;  %v3615_v35 = vmul.f32 %v1143_v41, %v3541_v18  ;;  %v618_v11 = vadd.f32 %v3355_v51, %v2896_v46  ;;  %v771_v26 = vadd.f32 %v3855_v50, %v2898_v47  ;;  %v3857_v51 = vld [vmem:[#allocation8_spill] sm:$0xff] }
 0x18f   : > { %2473 = verf.f32 %v963_v62  ;;  %v3622_v5 = vmul.f32 %v1145_v58, %v3553_v28  ;;  %v1147_v14 = vadd.f32 1.0, %v2458_v40  ;;  %v3626_v20 = vadd.f32 %v3856_v34, %v2892_v44  ;;  %v3862_v34 = vld [vmem:[#allocation24_spill] sm:$0xff] }
 0x190   : > { %v2462_v4 = vpop.eup %2461  ;;  %2475 = verf.f32 %v965_v60  ;;  %1792 = vmatmul.mubr.bf16.gmra.mrb[76].mxu1 %v1293_v32  ;;  %v1149_v18 = vadd.f32 1.0, %v2460_v7  ;;  %v3628_v27 = vmul.f32 0.5, %v614_v61  ;;  %v964_v56 = vmul.f32 0.70710677, %v618_v11 }
 0x191   : > { %v2464_v8 = vpop.eup %2463  ;;  %v3632_v3 = vadd.f32 %v3857_v51, %v2894_v45  ;;  %v3635_v28 = vmul.f32 %v1144_v63, %v3568_v29  ;;  %v3638_v1 = vmul.f32 %v1146_v53, %v3575_v24  ;;  %v3640_v37 = vmul.f32 0.5, %v767_v33  ;;  %v3859_v63 = vld [vmem:[#allocation21_spill] sm:$0xff] }
 0x192   : > { %v2466_v15 = vpop.eup %2465  ;;  %v966_v16 = vmul.f32 0.70710677, %v771_v26  ;;  %v1148_v30 = vadd.f32 1.0, %v2462_v4  ;;  %v1150_v59 = vadd.f32 1.0, %v2464_v8  ;;  %v867_v36 = vmul.f32 0.5, %v616_v10 }
 0x193   : > { %2477 = verf.f32 %v964_v56  ;;  %v3643_v61 = vmul.f32 %v1147_v14, %v3577_v55  ;;  %v869_v19 = vmul.f32 0.5, %v769_v54  ;;  %v967_v25 = vmul.f32 0.70710677, %v3626_v20  ;;  %v3858_v55 = vld [vmem:[#allocation20_spill] sm:$0xff]  ;;  %v3861_v14 = vld [vmem:[#allocation23_spill] sm:$0xff] }
 0x194   : > { %2479 = verf.f32 %v966_v16  ;;  %v2468_v43 = vpop.eup %2467  ;;  %v3647_v29 = vmul.f32 %v1149_v18, %v3582_v57  ;;  %v1151_v24 = vadd.f32 1.0, %v2466_v15  ;;  %v969_v33 = vmul.f32 0.70710677, %v3632_v3 }
 0x195   : > { %v3652_v48 = vadd.f32 %v3398_v12, %v2896_v46  ;;  %v868_v41 = vmul.f32 0.5, %v618_v11  ;;  %v3656_v49 = vadd.f32 %v3858_v55, %v2898_v47  ;;  %v1296_v10 = vpack.c.bf16 %v3597_v31, %v3571_v22 }
 0x196   : > { %v2470_v23 = vpop.eup %2469  ;;  %v1298_v58 = vpack.c.bf16 %v1238_v21, %v3573_v38  ;;  %v1244_v54 = vmul.f32 %v1148_v30, %v3587_v52  ;;  %v1246_v42 = vmul.f32 %v1150_v59, %v3599_v17  ;;  %v870_v40 = vmul.f32 0.5, %v771_v26  ;;  %v3860_v52 = vld [vmem:[#allocation22_spill] sm:$0xff] }
 0x197   : > { %v2472_v57 = vpop.eup %2471  ;;  %v968_v12 = vmul.f32 0.70710677, %v3652_v48  ;;  %v1153_v62 = vadd.f32 1.0, %v2468_v43  ;;  %2481 = verf.f32 %v967_v25  ;;  %v970_v7 = vmul.f32 0.70710677, %v3656_v49  ;;  %1670 = vmatprep.mubr.bf16.mxu0 %v1296_v10 }
 0x198   : > { %1799 = vmatprep.mubr.bf16.mxu1 %v1298_v58  ;;  %v626_v53 = vadd.f32 %v3859_v63, %v2892_v44  ;;  %v3668_v38 = vmul.f32 %v1151_v24, %v3601_v6  ;;  %2483 = verf.f32 %v969_v33  ;;  %v779_v31 = vadd.f32 %v3860_v52, %v2894_v45 }
 0x199   : > { %v2474_v22 = vpop.eup %2473  ;;  %v1295_v17 = vpack.c.bf16 %v3580_v2, %v3551_v39  ;;  %v1152_v60 = vadd.f32 1.0, %v2470_v23  ;;  %v1154_v32 = vadd.f32 1.0, %v2472_v57  ;;  %2485 = verf.f32 %v968_v12 }
 0x19a   : > { %v2476_v21 = vpop.eup %2475  ;;  %v1155_v11 = vadd.f32 1.0, %v2474_v22  ;;  %2487 = verf.f32 %v970_v7  ;;  %v971_v26 = vmul.f32 0.70710677, %v626_v53  ;;  %v973_v44 = vmul.f32 0.70710677, %v779_v31 }
 0x19b   : > { %v1157_v50 = vadd.f32 1.0, %v2476_v21  ;;  %1671 = vmatmul.mubr.bf16.gmra.mrb[80].mxu0 %v1295_v17  ;;  %v1297_v6 = vpack.c.bf16 %v3585_v0, %v3556_v13  ;;  %v628_v45 = vadd.f32 %v3861_v14, %v2896_v46  ;;  %v781_v39 = vadd.f32 %v3862_v34, %v2898_v47 }
 0x19c   : > { %v1251_v4 = vmul.f32 %v1155_v11, %v867_v36  ;;  %2489 = verf.f32 %v971_v26  ;;  %v1300_v18 = vpack.c.bf16 %v1244_v54, %v3635_v28  ;;  %v1302_v56 = vpack.c.bf16 %v1246_v42, %v3638_v1 }
 0x19d   : > { %v2478_v2 = vpop.eup %2477  ;;  %v3680_v8 = vmul.f32 %v1157_v50, %v869_v19  ;;  %v1249_v15 = vmul.f32 %v1153_v62, %v3610_v9  ;;  %2491 = verf.f32 %v973_v44  ;;  %1800 = vmatmul.mubr.bf16.gmra.mrb[80].mxu1 %v1297_v6  ;;  %v972_v13 = vmul.f32 0.70710677, %v628_v45 }
 0x19e   : > { %v2480_v51 = vpop.eup %2479  ;;  %v1156_v16 = vadd.f32 1.0, %v2478_v2  ;;  %v1248_v46 = vmul.f32 %v1152_v60, %v3628_v27  ;;  %v974_v30 = vmul.f32 0.70710677, %v781_v39  ;;  %1678 = vmatprep.mubr.bf16.mxu0 %v1300_v18  ;;  %1807 = vmatprep.mubr.bf16.mxu1 %v1302_v56  ;;  %v1299_v47 = vpack.c.bf16 %v3643_v61, %v3615_v35 }
 0x19f   : > { %v1158_v0 = vadd.f32 1.0, %v2480_v51  ;;  %v1250_v28 = vmul.f32 %v1154_v32, %v3640_v37  ;;  %2493 = verf.f32 %v972_v13  ;;  %v1301_v9 = vpack.c.bf16 %v3647_v29, %v3622_v5 }
 0x1a0   : > { %v1252_v59 = vmul.f32 %v1156_v16, %v868_v41  ;;  %2495 = verf.f32 %v974_v30  ;;  %v1303_v36 = vpack.c.bf16 %v1251_v4, %v3668_v38  ;;  %v1305_v27 = vpack.c.bf16 %v3680_v8, %v1249_v15  ;;  %v3701_v4 = vld [vmem:[%s3811_s4] ss:$0 sm:$0xff] }
 0x1a1   : > { %v1254_v1 = vmul.f32 %v1158_v0, %v870_v40  ;;  %v2482_v19 = vpop.eup %2481  ;;  %v871_v29 = vmul.f32 0.5, %v3626_v20  ;;  %v875_v41 = vmul.f32 0.5, %v626_v53  ;;  %v873_v10 = vmul.f32 0.5, %v3632_v3 }
 0x1a2   : > { %v1304_v25 = vpack.c.bf16 %v1252_v59, %v1248_v46  ;;  %v2484_v43 = vpop.eup %2483  ;;  %v1159_v37 = vadd.f32 1.0, %v2482_v19  ;;  %v877_v57 = vmul.f32 0.5, %v779_v31  ;;  %v872_v12 = vmul.f32 0.5, %v3652_v48 }
 0x1a3   : > { %1679 = vmatmul.mubr.bf16.gmra.mrb[84].mxu0 %v1299_v47  ;;  %v1306_v24 = vpack.c.bf16 %v1254_v1, %v1250_v28  ;;  %v2486_v33 = vpop.eup %2485  ;;  %v1161_v23 = vadd.f32 1.0, %v2484_v43  ;;  %v876_v52 = vmul.f32 0.5, %v628_v45  ;;  %v874_v20 = vmul.f32 0.5, %v3656_v49 }
 0x1a4   : > { %1686 = vmatprep.mubr.bf16.mxu0 %v1304_v25  ;;  %v2488_v35 = vpop.eup %2487  ;;  %v1160_v58 = vadd.f32 1.0, %v2486_v33  ;;  %v1255_v40 = vmul.f32 %v1159_v37, %v871_v29  ;;  %v878_v53 = vmul.f32 0.5, %v781_v39 }
 0x1a5   : > { %1808 = vmatmul.mubr.bf16.gmra.mrb[84].mxu1 %v1301_v9  ;;  %v1162_v62 = vadd.f32 1.0, %v2488_v35  ;;  %v1257_v22 = vmul.f32 %v1161_v23, %v873_v10 }
 0x1a6   : > { %v2490_v61 = vpop.eup %2489  ;;  %1815 = vmatprep.mubr.bf16.mxu1 %v1306_v24  ;;  %v1256_v31 = vmul.f32 %v1160_v58, %v872_v12 }
 0x1a7   : > { %v2492_v5 = vpop.eup %2491  ;;  %v1163_v55 = vadd.f32 1.0, %v2490_v61  ;;  %v1258_v11 = vmul.f32 %v1162_v62, %v874_v20 }
 0x1a8   : > { %v1165_v54 = vadd.f32 1.0, %v2492_v5 }
 0x1a9   : > { %v2494_v42 = vpop.eup %2493  ;;  %v1259_v7 = vmul.f32 %v1163_v55, %v875_v41 }
 0x1aa   : > { %v2496_v63 = vpop.eup %2495  ;;  %v1261_v38 = vmul.f32 %v1165_v54, %v877_v57  ;;  %v1164_v17 = vadd.f32 1.0, %v2494_v42 }
 0x1ab   : > { %1687 = vmatmul.mubr.bf16.gmra.mrb[88].mxu0 %v1303_v36  ;;  %v1166_v3 = vadd.f32 1.0, %v2496_v63  ;;  %v1307_v21 = vpack.c.bf16 %v1259_v7, %v1255_v40 }
 0x1ac   : > { %v1260_v60 = vmul.f32 %v1164_v17, %v876_v52  ;;  %v1309_v32 = vpack.c.bf16 %v1261_v38, %v1257_v22 }
 0x1ad   : > { %v1262_v48 = vmul.f32 %v1166_v3, %v878_v53  ;;  %1816 = vmatmul.mubr.bf16.gmra.mrb[88].mxu1 %v1305_v27 }
 0x1ae   : > { %v1308_v50 = vpack.c.bf16 %v1260_v60, %v1256_v31 }
 0x1af   : > { %v1310_v26 = vpack.c.bf16 %v1262_v48, %v1258_v11 }
 0x1b0   : > { %1694 = vmatprep.mubr.bf16.mxu0 %v1308_v50 }
 0x1b1   : > { %1823 = vmatprep.mubr.bf16.mxu1 %v1310_v26 }
 0x1b3   : > { %1695 = vmatmul.mubr.bf16.gmra.mrb[92].mxu0 %v1307_v21 }
 0x1b5   : > { %1824 = vmatmul.mubr.bf16.gmra.mrb[92].mxu1 %v1309_v32 }
 0x202   : > { %v2022_v44 = vpop.f32.mrb[48].mxu0  ;;  %v2110_v49 = vpop.f32.mrb[48].mxu1 }
 0x203   : > { %v2023_v6 = vpop.f32.mrb[49].mxu0  ;;  %v2111_v14 = vpop.f32.mrb[49].mxu1 }
 0x204   : > { %v2024_v45 = vadd.f32 %v2023_v6, %v2022_v44  ;;  %v2112_v34 = vadd.f32 %v2111_v14, %v2110_v49  ;;  %v2025_v39 = vpop.f32.mrb[50].mxu0  ;;  %v2113_v2 = vpop.f32.mrb[50].mxu1 }
 0x205   : > { %v2026_v8 = vpop.f32.mrb[51].mxu0  ;;  %v2114_v18 = vpop.f32.mrb[51].mxu1 }
 0x206   : > { %v1609_v56 = vadd.f32 %v2024_v45, %v3701_v4  ;;  %v2027_v51 = vadd.f32 %v2026_v8, %v2025_v39  ;;  %v2115_v15 = vadd.f32 %v2114_v18, %v2113_v2 }
 0x208   : > { %v1738_v16 = vadd.f32 %v2112_v34, %v1609_v56  ;;  %v1612_v13 = vadd.f32 %v2027_v51, %v3701_v4 }
 0x20a   : > { %1832 = vst [vmem:[%s3707_s17] sm:$0xff] %v1738_v16  ;;  %v1741_v46 = vadd.f32 %v2115_v15, %v1612_v13 }
 0x20c   : > { %1833 = vst [vmem:[%s3707_s17 + $0x8] sm:$0xff] %v1741_v46 }
 0x211   : > { %v2028_v0 = vpop.f32.mrb[52].mxu0 }
 0x212   : > { %v2029_v47 = vpop.f32.mrb[53].mxu0 }
 0x213   : > { %v2116_v30 = vpop.f32.mrb[52].mxu1  ;;  %v2030_v59 = vadd.f32 %v2029_v47, %v2028_v0  ;;  %v2031_v1 = vpop.f32.mrb[54].mxu0 }
 0x214   : > { %v2117_v28 = vpop.f32.mrb[53].mxu1  ;;  %v2032_v27 = vpop.f32.mrb[55].mxu0 }
 0x215   : > { %v2118_v9 = vadd.f32 %v2117_v28, %v2116_v30  ;;  %v2119_v36 = vpop.f32.mrb[54].mxu1  ;;  %v1617_v25 = vadd.f32 %v2030_v59, %v3701_v4  ;;  %v2033_v43 = vadd.f32 %v2032_v27, %v2031_v1 }
 0x216   : > { %v2120_v19 = vpop.f32.mrb[55].mxu1 }
 0x217   : > { %v2121_v24 = vadd.f32 %v2120_v19, %v2119_v36  ;;  %v1746_v33 = vadd.f32 %v2118_v9, %v1617_v25  ;;  %v1620_v35 = vadd.f32 %v2033_v43, %v3701_v4 }
 0x219   : > { %1834 = vst [vmem:[%s3707_s17 + $0x10] sm:$0xff] %v1746_v33  ;;  %v1749_v37 = vadd.f32 %v2121_v24, %v1620_v35 }
 0x21b   : > { %1835 = vst [vmem:[%s3707_s17 + $0x18] sm:$0xff] %v1749_v37 }
 0x220   : > { %v2034_v61 = vpop.f32.mrb[56].mxu0  ;;  %v2122_v23 = vpop.f32.mrb[56].mxu1 }
 0x221   : > { %v2035_v5 = vpop.f32.mrb[57].mxu0  ;;  %v2123_v29 = vpop.f32.mrb[57].mxu1 }
 0x222   : > { %v2036_v41 = vadd.f32 %v2035_v5, %v2034_v61  ;;  %v2124_v55 = vadd.f32 %v2123_v29, %v2122_v23  ;;  %v2037_v10 = vpop.f32.mrb[58].mxu0  ;;  %v2125_v58 = vpop.f32.mrb[58].mxu1 }
 0x223   : > { %v2038_v57 = vpop.f32.mrb[59].mxu0  ;;  %v2126_v54 = vpop.f32.mrb[59].mxu1 }
 0x224   : > { %v1625_v42 = vadd.f32 %v2036_v41, %v3701_v4  ;;  %v2039_v40 = vadd.f32 %v2038_v57, %v2037_v10  ;;  %v2127_v12 = vadd.f32 %v2126_v54, %v2125_v58 }
 0x226   : > { %v1754_v62 = vadd.f32 %v2124_v55, %v1625_v42  ;;  %v1628_v7 = vadd.f32 %v2039_v40, %v3701_v4 }
 0x228   : > { %1836 = vst [vmem:[%s3707_s17 + $0x20] sm:$0xff] %v1754_v62  ;;  %v1757_v63 = vadd.f32 %v2127_v12, %v1628_v7 }
 0x22a   : > { %1837 = vst [vmem:[%s3707_s17 + $0x28] sm:$0xff] %v1757_v63 }
 0x22b   : > { %v2040_v22 = vpop.f32.mrb[60].mxu0  ;;  %v2128_v38 = vpop.f32.mrb[60].mxu1 }
 0x22c   : > { %v2041_v52 = vpop.f32.mrb[61].mxu0  ;;  %v2129_v20 = vpop.f32.mrb[61].mxu1 }
 0x22d   : > { %v2042_v17 = vadd.f32 %v2041_v52, %v2040_v22  ;;  %v2043_v53 = vpop.f32.mrb[62].mxu0  ;;  %v2130_v3 = vadd.f32 %v2129_v20, %v2128_v38  ;;  %v2131_v21 = vpop.f32.mrb[62].mxu1 }
 0x22e   : > { %v2044_v31 = vpop.f32.mrb[63].mxu0  ;;  %v2132_v11 = vpop.f32.mrb[63].mxu1 }
 0x22f   : > { %v1633_v60 = vadd.f32 %v2042_v17, %v3701_v4  ;;  %v2045_v32 = vadd.f32 %v2044_v31, %v2043_v53  ;;  %v2133_v48 = vadd.f32 %v2132_v11, %v2131_v21 }
 0x231   : > { %v1762_v50 = vadd.f32 %v2130_v3, %v1633_v60  ;;  %v1636_v26 = vadd.f32 %v2045_v32, %v3701_v4 }
 0x233   : > { %1838 = vst [vmem:[%s3707_s17 + $0x30] sm:$0xff] %v1762_v50  ;;  %v1765_v44 = vadd.f32 %v2133_v48, %v1636_v26 }
 0x235   : > { %1839 = vst [vmem:[%s3707_s17 + $0x38] sm:$0xff] %v1765_v44 }
 0x23a   : > { %v2046_v49 = vpop.f32.mrb[64].mxu0 }
 0x23b   : > { %v2047_v6 = vpop.f32.mrb[65].mxu0  ;;  %v2134_v34 = vpop.f32.mrb[64].mxu1 }
 0x23c   : > { %v2048_v14 = vadd.f32 %v2047_v6, %v2046_v49  ;;  %v2049_v45 = vpop.f32.mrb[66].mxu0  ;;  %v2135_v8 = vpop.f32.mrb[65].mxu1 }
 0x23d   : > { %v2050_v39 = vpop.f32.mrb[67].mxu0  ;;  %v2136_v56 = vadd.f32 %v2135_v8, %v2134_v34  ;;  %v2137_v51 = vpop.f32.mrb[66].mxu1 }
 0x23e   : > { %v1641_v2 = vadd.f32 %v2048_v14, %v3701_v4  ;;  %v2051_v18 = vadd.f32 %v2050_v39, %v2049_v45  ;;  %v2138_v16 = vpop.f32.mrb[67].mxu1 }
 0x23f   : > { %v2139_v46 = vadd.f32 %v2138_v16, %v2137_v51 }
 0x240   : > { %v1644_v15 = vadd.f32 %v2051_v18, %v3701_v4  ;;  %v1770_v13 = vadd.f32 %v2136_v56, %v1641_v2 }
 0x242   : > { %1840 = vst [vmem:[%s3707_s17 + $0x40] sm:$0xff] %v1770_v13  ;;  %v1773_v0 = vadd.f32 %v2139_v46, %v1644_v15 }
 0x244   : > { %1841 = vst [vmem:[%s3707_s17 + $0x48] sm:$0xff] %v1773_v0 }
 0x247   : > { %v2052_v30 = vpop.f32.mrb[68].mxu0 }
 0x248   : > { %v2053_v47 = vpop.f32.mrb[69].mxu0 }
 0x249   : > { %v2054_v28 = vadd.f32 %v2053_v47, %v2052_v30  ;;  %v2055_v59 = vpop.f32.mrb[70].mxu0  ;;  %v2140_v9 = vpop.f32.mrb[68].mxu1 }
 0x24a   : > { %v2056_v1 = vpop.f32.mrb[71].mxu0  ;;  %v2141_v27 = vpop.f32.mrb[69].mxu1 }
 0x24b   : > { %v1649_v36 = vadd.f32 %v2054_v28, %v3701_v4  ;;  %v2057_v19 = vadd.f32 %v2056_v1, %v2055_v59  ;;  %v2142_v25 = vadd.f32 %v2141_v27, %v2140_v9  ;;  %v2143_v43 = vpop.f32.mrb[70].mxu1 }
 0x24c   : > { %v2144_v33 = vpop.f32.mrb[71].mxu1 }
 0x24d   : > { %v1652_v24 = vadd.f32 %v2057_v19, %v3701_v4  ;;  %v1778_v35 = vadd.f32 %v2142_v25, %v1649_v36  ;;  %v2145_v37 = vadd.f32 %v2144_v33, %v2143_v43 }
 0x24f   : > { %1842 = vst [vmem:[%s3707_s17 + $0x50] sm:$0xff] %v1778_v35  ;;  %v1781_v61 = vadd.f32 %v2145_v37, %v1652_v24 }
 0x251   : > { %1843 = vst [vmem:[%s3707_s17 + $0x58] sm:$0xff] %v1781_v61 }
 0x254   : > { %v2058_v23 = vpop.f32.mrb[72].mxu0 }
 0x255   : > { %v2059_v5 = vpop.f32.mrb[73].mxu0 }
 0x256   : > { %v2060_v29 = vadd.f32 %v2059_v5, %v2058_v23  ;;  %v2061_v41 = vpop.f32.mrb[74].mxu0  ;;  %v2146_v55 = vpop.f32.mrb[72].mxu1 }
 0x257   : > { %v2062_v10 = vpop.f32.mrb[75].mxu0  ;;  %v2147_v57 = vpop.f32.mrb[73].mxu1 }
 0x258   : > { %v1657_v58 = vadd.f32 %v2060_v29, %v3701_v4  ;;  %v2063_v54 = vadd.f32 %v2062_v10, %v2061_v41  ;;  %v2148_v42 = vadd.f32 %v2147_v57, %v2146_v55  ;;  %v2149_v40 = vpop.f32.mrb[74].mxu1 }
 0x259   : > { %v2150_v62 = vpop.f32.mrb[75].mxu1 }
 0x25a   : > { %v1660_v12 = vadd.f32 %v2063_v54, %v3701_v4  ;;  %v1786_v7 = vadd.f32 %v2148_v42, %v1657_v58  ;;  %v2151_v63 = vadd.f32 %v2150_v62, %v2149_v40 }
 0x25c   : > { %1844 = vst [vmem:[%s3707_s17 + $0x60] sm:$0xff] %v1786_v7  ;;  %v1789_v22 = vadd.f32 %v2151_v63, %v1660_v12 }
 0x25e   : > { %1845 = vst [vmem:[%s3707_s17 + $0x68] sm:$0xff] %v1789_v22 }
 0x260   : > { %v2064_v38 = vpop.f32.mrb[76].mxu0 }
 0x261   : > { %v2065_v52 = vpop.f32.mrb[77].mxu0 }
 0x262   : > { %v2066_v20 = vadd.f32 %v2065_v52, %v2064_v38  ;;  %v2067_v53 = vpop.f32.mrb[78].mxu0 }
 0x263   : > { %v2152_v17 = vpop.f32.mrb[76].mxu1  ;;  %v2068_v21 = vpop.f32.mrb[79].mxu0 }
 0x264   : > { %v2153_v3 = vpop.f32.mrb[77].mxu1  ;;  %v1665_v31 = vadd.f32 %v2066_v20, %v3701_v4  ;;  %v2069_v11 = vadd.f32 %v2068_v21, %v2067_v53 }
 0x265   : > { %v2154_v60 = vadd.f32 %v2153_v3, %v2152_v17  ;;  %v2155_v32 = vpop.f32.mrb[78].mxu1 }
 0x266   : > { %v2156_v48 = vpop.f32.mrb[79].mxu1  ;;  %v1668_v26 = vadd.f32 %v2069_v11, %v3701_v4 }
 0x267   : > { %v1794_v50 = vadd.f32 %v2154_v60, %v1665_v31  ;;  %v2157_v44 = vadd.f32 %v2156_v48, %v2155_v32 }
 0x269   : > { %1846 = vst [vmem:[%s3707_s17 + $0x70] sm:$0xff] %v1794_v50  ;;  %v1797_v49 = vadd.f32 %v2157_v44, %v1668_v26 }
 0x26b   : > { %1847 = vst [vmem:[%s3707_s17 + $0x78] sm:$0xff] %v1797_v49 }
 0x26e   : > { %v2070_v6 = vpop.f32.mrb[80].mxu0 }
 0x26f   : > { %v2071_v14 = vpop.f32.mrb[81].mxu0 }
 0x270   : > { %v2072_v45 = vadd.f32 %v2071_v14, %v2070_v6  ;;  %v2073_v34 = vpop.f32.mrb[82].mxu0  ;;  %v2158_v39 = vpop.f32.mrb[80].mxu1 }
 0x271   : > { %v2074_v2 = vpop.f32.mrb[83].mxu0  ;;  %v2159_v18 = vpop.f32.mrb[81].mxu1 }
 0x272   : > { %v1673_v8 = vadd.f32 %v2072_v45, %v3701_v4  ;;  %v2075_v56 = vadd.f32 %v2074_v2, %v2073_v34  ;;  %v2160_v51 = vadd.f32 %v2159_v18, %v2158_v39  ;;  %v2161_v15 = vpop.f32.mrb[82].mxu1 }
 0x273   : > { %v2162_v13 = vpop.f32.mrb[83].mxu1 }
 0x274   : > { %v1676_v16 = vadd.f32 %v2075_v56, %v3701_v4  ;;  %v1802_v46 = vadd.f32 %v2160_v51, %v1673_v8  ;;  %v2163_v0 = vadd.f32 %v2162_v13, %v2161_v15 }
 0x276   : > { %v2076_v30 = vpop.f32.mrb[84].mxu0  ;;  %1848 = vst [vmem:[%s3707_s17 + $0x80] sm:$0xff] %v1802_v46  ;;  %v1805_v47 = vadd.f32 %v2163_v0, %v1676_v16 }
 0x277   : > { %v2077_v28 = vpop.f32.mrb[85].mxu0 }
 0x278   : > { %v2078_v59 = vadd.f32 %v2077_v28, %v2076_v30  ;;  %v2079_v9 = vpop.f32.mrb[86].mxu0  ;;  %1849 = vst [vmem:[%s3707_s17 + $0x88] sm:$0xff] %v1805_v47  ;;  %v2164_v1 = vpop.f32.mrb[84].mxu1 }
 0x279   : > { %v2080_v36 = vpop.f32.mrb[87].mxu0  ;;  %v2165_v19 = vpop.f32.mrb[85].mxu1 }
 0x27a   : > { %v1681_v27 = vadd.f32 %v2078_v59, %v3701_v4  ;;  %v2081_v25 = vadd.f32 %v2080_v36, %v2079_v9  ;;  %v2166_v43 = vadd.f32 %v2165_v19, %v2164_v1  ;;  %v2167_v24 = vpop.f32.mrb[86].mxu1 }
 0x27b   : > { %v2168_v35 = vpop.f32.mrb[87].mxu1 }
 0x27c   : > { %v1684_v33 = vadd.f32 %v2081_v25, %v3701_v4  ;;  %v1810_v37 = vadd.f32 %v2166_v43, %v1681_v27  ;;  %v2169_v61 = vadd.f32 %v2168_v35, %v2167_v24 }
 0x27e   : > { %v2082_v23 = vpop.f32.mrb[88].mxu0  ;;  %1850 = vst [vmem:[%s3707_s17 + $0x90] sm:$0xff] %v1810_v37  ;;  %v1813_v5 = vadd.f32 %v2169_v61, %v1684_v33 }
 0x27f   : > { %v2083_v29 = vpop.f32.mrb[89].mxu0 }
 0x280   : > { %v2084_v41 = vadd.f32 %v2083_v29, %v2082_v23  ;;  %v2085_v55 = vpop.f32.mrb[90].mxu0  ;;  %1851 = vst [vmem:[%s3707_s17 + $0x98] sm:$0xff] %v1813_v5  ;;  %v2170_v10 = vpop.f32.mrb[88].mxu1 }
 0x281   : > { %v2086_v58 = vpop.f32.mrb[91].mxu0  ;;  %v2171_v54 = vpop.f32.mrb[89].mxu1 }
 0x282   : > { %v1689_v57 = vadd.f32 %v2084_v41, %v3701_v4  ;;  %v2087_v42 = vadd.f32 %v2086_v58, %v2085_v55  ;;  %v2172_v40 = vadd.f32 %v2171_v54, %v2170_v10  ;;  %v2173_v12 = vpop.f32.mrb[90].mxu1 }
 0x283   : > { %v2174_v7 = vpop.f32.mrb[91].mxu1 }
 0x284   : > { %v1692_v62 = vadd.f32 %v2087_v42, %v3701_v4  ;;  %v1818_v63 = vadd.f32 %v2172_v40, %v1689_v57  ;;  %v2175_v22 = vadd.f32 %v2174_v7, %v2173_v12 }
 0x286   : > { %v2088_v38 = vpop.f32.mrb[92].mxu0  ;;  %1852 = vst [vmem:[%s3707_s17 + $0xa0] sm:$0xff] %v1818_v63  ;;  %v1821_v52 = vadd.f32 %v2175_v22, %v1692_v62 }
 0x287   : > { %v2089_v17 = vpop.f32.mrb[93].mxu0 }
 0x288   : > { %v2090_v20 = vadd.f32 %v2089_v17, %v2088_v38  ;;  %v2091_v53 = vpop.f32.mrb[94].mxu0  ;;  %1853 = vst [vmem:[%s3707_s17 + $0xa8] sm:$0xff] %v1821_v52  ;;  %v2176_v3 = vpop.f32.mrb[92].mxu1 }
 0x289   : > { %v2092_v21 = vpop.f32.mrb[95].mxu0  ;;  %v2177_v60 = vpop.f32.mrb[93].mxu1 }
 0x28a   : > { %v1697_v31 = vadd.f32 %v2090_v20, %v3701_v4  ;;  %v2093_v32 = vadd.f32 %v2092_v21, %v2091_v53  ;;  %v2178_v11 = vadd.f32 %v2177_v60, %v2176_v3  ;;  %v2179_v48 = vpop.f32.mrb[94].mxu1 }
 0x28b   : > { %v2180_v26 = vpop.f32.mrb[95].mxu1 }
 0x28c   : > { %v1700_v50 = vadd.f32 %v2093_v32, %v3701_v4  ;;  %v1826_v44 = vadd.f32 %v2178_v11, %v1697_v31  ;;  %v2181_v49 = vadd.f32 %v2180_v26, %v2179_v48 }
 0x28e   : > { %1854 = vst [vmem:[%s3707_s17 + $0xb0] sm:$0xff] %v1826_v44  ;;  %v1829_v6 = vadd.f32 %v2181_v49, %v1700_v50 }
 0x290   : > { %1855 = vst [vmem:[%s3707_s17 + $0xb8] sm:$0xff] %v1829_v6 }
 0x291   : > { %2510 = shalt.err (!%p2507_p3)
}
 0x292   : > { %s2511_s14 = scalar_lea.hbm %s3761_s9, 3072  ;;  %s2515_s23 = scalar_lea.hbm %s3812_s5, 6144 }
 0x293   : > { %p2512_p4 = scmp.ne.s32.totalorder %s3761_s9, %s2511_s14  ;;  %p2516_p9 = scmp.lt.u32.totalorder %s3761_s9, %s3812_s5 }
 0x294   : > { %p2517_p10 = scmp.lt.u32.totalorder %s2515_s23, %s2511_s14  ;;  %p2519_p12 = scmp.lt.u32.totalorder %s2511_s14, %s3761_s9 }
 0x295   : > { %p2513_p7 = pnand %p2512_p4, %p2633_p5 }
 0x296   : > { %p2518_p11 = por %p2517_p10, %p2516_p9 }
 0x297   : > { %p2514_p8 = pneg %p2513_p7 }
 0x298   : > { %p2520_p13 = por %p2519_p12, %p2518_p11 }
 0x29a   : > { %p2521_p0 = pnand %p2520_p13, %p2514_p8 }
 0x29c   : > { %2524 = shalt.err (!%p2521_p0)
}
 0x29d   : > { %s2563_s17 = smov 128   ;;  %s2564_s30 = smov 8  }
 0x29e   : > { %2183 = dma.vmem_to_hbm [thread:$0]  (%p2633_p5), %s3755_s6, 3072, %s3761_s9, %s3766_s22, %s2563_s17, %s2563_s17, %s2564_s30  }
 0x29f PF: > { %p2189_p1 = scmp.ge.s32.totalorder %s2559_s21, 2  ;;  %s1885_s7 = sand.u32 1, %s2547_s18  }
 0x2a0   : > { %s1886_s8 = scalar_lea.sflag [#allocation3], %s1885_s7 }
 0x2a1   : > { %p2186_p2 = pnand %p2189_p1, %p2637_p6 }
 0x2a3   : > { %2542 = dma.done.wait (!%p2186_p2), %s1886_s8, 3072  }
 0x2a4   : > { %2544 = vsyncadd (!%p2186_p2), %s1886_s8, 4294964224  ;;  %p15_p3 = scmp.ge.s32.totalorder %s2620_s24, 4   ;;  %s3863_s18 = smov %s2551_s19 }
 0x2a5   : > { %s3864_s19 = smov %s2555_s20  ;;  %s3865_s20 = smov %s2631_s27 }
 0x2a6   : > { %s3866_s21 = smov %s2620_s24  ;;  %17 = sbr.rel (!%p15_p3) target bundleno = 3 (0x3), region = 75 }
 0x2ad   :  { %1891 = vsyncpa [#allocation3], 1 }
 0x2ae   :  { %1893 = vsyncpa [#allocation3 + $0x1], 1 }

</bundles_post_ra>
